<compile_context>
chip_gen: v7x
topology: tpu7x:2x2x1
jax: 0.10.0
libtpu: 0.0.40
codegen_flags: <defaults>
</compile_context>

<pallas_src>
import jax
import jax.numpy as jnp
from jax.experimental import pallas as pl
from jax.experimental.pallas import tpu as pltpu

_BN_EPS = 1e-5
_INV_SQRT2 = 0.7071067811865476


def _round_up(x, m):
    return (x + m - 1) // m * m


# --------------------------------------------------------------------------
# Fused Conv3x3 + (folded) BN + GELU kernel
# --------------------------------------------------------------------------
def _conv3x3_bn_gelu_kernel(x_ref, w_ref, b_ref, o_ref):
    # x_ref: (H+2, W+2, C)   zero-padded NHWC image, bf16
    # w_ref: (9, C, TN)      BN-scale-folded weights, bf16
    # b_ref: (1, TN)         fused (conv bias + BN shift), f32
    # o_ref: (H*W, TN)       output rows for this image / OC tile, f32
    Hp, Wp, C = x_ref.shape
    H, W = Hp - 2, Wp - 2
    M, TN = o_ref.shape

    x = x_ref[...]                                   # single VMEM load (bf16)
    acc = jnp.zeros((M, TN), jnp.float32)
    for ky in range(3):                              # static, unrolled
        for kx in range(3):
            win = x[ky:ky + H, kx:kx + W, :].reshape(M, C)
            acc += jnp.dot(win, w_ref[ky * 3 + kx],
                           preferred_element_type=jnp.float32)

    y = acc + b_ref[...]                             # conv bias + BN shift (f32)
    # exact GELU (matches torch.nn.GELU() default, erf-based)
    y = 0.5 * y * (1.0 + jax.lax.erf(y * _INV_SQRT2))
    o_ref[...] = y


def conv_bn_gelu(x_nchw, params):
    """Forward of the PyTorch `Conv` module: GELU(BN(Conv2d_3x3_p1_s1(x)))."""
    w_oihw = params["conv_w"]                        # (OC, IC, 3, 3)
    conv_b = params["conv_b"]                        # (OC,)
    OC, IC, KH, KW = w_oihw.shape
    N, C, H, W = x_nchw.shape
    assert C == IC and KH == 3 and KW == 3

    # ---- plain-JAX glue: layout, padding, BN folding (all tiny) ----
    x = jnp.transpose(x_nchw, (0, 2, 3, 1)).astype(jnp.float32)   # NCHW -> NHWC
    xp = jnp.pad(x, ((0, 0), (1, 1), (1, 1), (0, 0))).astype(jnp.bfloat16)

    scale = params["gamma"] / jnp.sqrt(params["var"] + _BN_EPS)   # (OC,)
    shift = params["beta"] - params["mean"] * scale               # (OC,)
    # (OC, IC, 3, 3) -> (3, 3, IC, OC) -> (9, IC, OC); fold BN scale per OC col.
    w9 = jnp.transpose(w_oihw, (2, 3, 1, 0)).reshape(9, IC, OC)
    w9 = (w9 * scale[None, None, :]).astype(jnp.bfloat16)
    fused_bias = (scale * conv_b + shift).astype(jnp.float32)     # (OC,)

    # lane-dense output: pad OC up to a multiple of 128
    OCp = _round_up(OC, 128)
    if OCp != OC:
        w9 = jnp.pad(w9, ((0, 0), (0, 0), (0, OCp - OC)))
        fused_bias = jnp.pad(fused_bias, (0, OCp - OC))
    bias2d = fused_bias.reshape(1, OCp)

    tn = 256 if OCp % 256 == 0 else 128              # 256-wide tiles on v6e/v7x
    grid = (N, OCp // tn)                            # batch leading (megacore)

    out = pl.pallas_call(
        _conv3x3_bn_gelu_kernel,
        out_shape=jax.ShapeDtypeStruct((N, H * W, OCp), jnp.float32),
        grid_spec=pltpu.PrefetchScalarGridSpec(
            num_scalar_prefetch=0,
            grid=grid,
            in_specs=[
                pl.BlockSpec((pl.Squeezed(), H + 2, W + 2, IC),
                             lambda n, j: (n, 0, 0, 0)),
                pl.BlockSpec((9, IC, tn), lambda n, j: (0, 0, j)),
                pl.BlockSpec((1, tn), lambda n, j: (0, j)),
            ],
            out_specs=pl.BlockSpec((pl.Squeezed(), H * W, tn),
                                   lambda n, j: (n, 0, j)),
        ),
        compiler_params=pltpu.CompilerParams(
            dimension_semantics=("parallel", "parallel")),
    )(xp, w9, bias2d)

    y = out[:, :, :OC].reshape(N, H, W, OC)
    return jnp.transpose(y, (0, 3, 1, 2))            # NHWC -> NCHW


# --------------------------------------------------------------------------
# Deterministic parameter init (shapes match the PyTorch module)
# --------------------------------------------------------------------------
def init_params(in_channels, out_channels, seed=0):
    keys = jax.random.split(jax.random.PRNGKey(seed), 6)
    fan_in = in_channels * 9
    bound = 1.0 / (fan_in ** 0.5)
    return {
        "conv_w": jax.random.uniform(keys[0], (out_channels, in_channels, 3, 3),
                                     jnp.float32, -bound, bound),
        "conv_b": jax.random.uniform(keys[1], (out_channels,), jnp.float32,
                                     -bound, bound),
        "gamma": 1.0 + 0.05 * jax.random.normal(keys[2], (out_channels,), jnp.float32),
        "beta": 0.05 * jax.random.normal(keys[3], (out_channels,), jnp.float32),
        "mean": 0.05 * jax.random.normal(keys[4], (out_channels,), jnp.float32),
        "var": jax.random.uniform(keys[5], (out_channels,), jnp.float32, 0.5, 1.5),
    }


# --------------------------------------------------------------------------
# Pure-JAX reference (for a correctness sanity check)
# --------------------------------------------------------------------------
def _reference(x_nchw, params):
    y = jax.lax.conv_general_dilated(
        x_nchw, params["conv_w"], window_strides=(1, 1),
        padding=((1, 1), (1, 1)),
        dimension_numbers=("NCHW", "OIHW", "NCHW"))
    y = y + params["conv_b"][None, :, None, None]
    scale = params["gamma"] / jnp.sqrt(params["var"] + _BN_EPS)
    shift = params["beta"] - params["mean"] * scale
    y = y * scale[None, :, None, None] + shift[None, :, None, None]
    return 0.5 * y * (1.0 + jax.lax.erf(y * _INV_SQRT2))


if __name__ == "__main__":
    in_c, out_c = 4, 32
    params = init_params(in_c, out_c, seed=0)
    # input consistent with the module: NCHW, batch=2, channels=4, spatial=16
    x = jax.random.normal(jax.random.PRNGKey(0), (2, in_c, 16, 16), jnp.float32)

    fwd = jax.jit(conv_bn_gelu)
    y = jax.block_until_ready(fwd(x, params))
    assert y.shape == (2, out_c, 16, 16), y.shape
    assert bool(jnp.isfinite(y).all())

    # sanity check against plain-JAX reference (bf16 matmul operands -> loose tol)
    y_ref = _reference(x, params)
    max_err = float(jnp.max(jnp.abs(y - y_ref)))
    assert max_err < 5e-2, f"max abs err {max_err}"

    print("KERNEL_OK")
</pallas_src>

<mosaic_0001>
module attributes {stable_mosaic.version = 11 : i64} {
  func.func @_conv3x3_bn_gelu_kernel(%arg0: i32, %arg1: i32, %arg2: memref<1x18x18x4xbf16, #tpu.memory_space<vmem>>, %arg3: memref<9x4x128xbf16, #tpu.memory_space<vmem>>, %arg4: memref<1x128xf32, #tpu.memory_space<vmem>>, %arg5: memref<1x256x128xf32, #tpu.memory_space<vmem>>) attributes {dimension_semantics = [#tpu.dimension_semantics<parallel>, #tpu.dimension_semantics<parallel>], iteration_bounds = array<i64: 2, 1>, scalar_prefetch = 0 : i64, scratch_operands = 0 : i64, tpu.core_type = #tpu.core_type<tc>, window_params = [{transform_indices = @transform_0, window_bounds = array<i64: 1, 18, 18, 4>}, {transform_indices = @transform_1, window_bounds = array<i64: 9, 4, 128>}, {transform_indices = @transform_2, window_bounds = array<i64: 1, 128>}, {transform_indices = @transform_3, window_bounds = array<i64: 1, 256, 128>}]} {
    %c0 = arith.constant 0 : index
    %c0_0 = arith.constant 0 : index
    %c0_1 = arith.constant 0 : index
    %c0_2 = arith.constant 0 : index
    %0 = vector.load %arg2[%c0, %c0_0, %c0_1, %c0_2] : memref<1x18x18x4xbf16, #tpu.memory_space<vmem>>, vector<1x18x18x4xbf16>
    %1 = vector.shape_cast %0 : vector<1x18x18x4xbf16> to vector<18x18x4xbf16>
    %cst = arith.constant 0.000000e+00 : f32
    %2 = vector.broadcast %cst : f32 to vector<256x128xf32>
    %3 = vector.extract_strided_slice %1 {offsets = [0, 0, 0], sizes = [16, 16, 4], strides = [1, 1, 1]} : vector<18x18x4xbf16> to vector<16x16x4xbf16>
    %4 = vector.shape_cast %3 : vector<16x16x4xbf16> to vector<256x4xbf16>
    %c0_3 = arith.constant 0 : index
    %c0_4 = arith.constant 0 : index
    %c0_5 = arith.constant 0 : index
    %5 = vector.load %arg3[%c0_3, %c0_4, %c0_5] : memref<9x4x128xbf16, #tpu.memory_space<vmem>>, vector<1x4x128xbf16>
    %6 = vector.shape_cast %5 : vector<1x4x128xbf16> to vector<4x128xbf16>
    %cst_6 = arith.constant dense<0.000000e+00> : vector<256x128xf32>
    %7 = tpu.matmul %4, %6, %cst_6 {dimension_numbers = #tpu.dot_dimension_numbers<[1], [0], [0], [1], [0, 0, 1, 1], [], []>} : vector<256x4xbf16>, vector<4x128xbf16>, vector<256x128xf32> -> vector<256x128xf32>
    %8 = arith.addf %2, %7 : vector<256x128xf32>
    %9 = vector.extract_strided_slice %1 {offsets = [0, 1, 0], sizes = [16, 16, 4], strides = [1, 1, 1]} : vector<18x18x4xbf16> to vector<16x16x4xbf16>
    %10 = vector.shape_cast %9 : vector<16x16x4xbf16> to vector<256x4xbf16>
    %c1 = arith.constant 1 : index
    %c0_7 = arith.constant 0 : index
    %c0_8 = arith.constant 0 : index
    %11 = vector.load %arg3[%c1, %c0_7, %c0_8] : memref<9x4x128xbf16, #tpu.memory_space<vmem>>, vector<1x4x128xbf16>
    %12 = vector.shape_cast %11 : vector<1x4x128xbf16> to vector<4x128xbf16>
    %cst_9 = arith.constant dense<0.000000e+00> : vector<256x128xf32>
    %13 = tpu.matmul %10, %12, %cst_9 {dimension_numbers = #tpu.dot_dimension_numbers<[1], [0], [0], [1], [0, 0, 1, 1], [], []>} : vector<256x4xbf16>, vector<4x128xbf16>, vector<256x128xf32> -> vector<256x128xf32>
    %14 = arith.addf %8, %13 : vector<256x128xf32>
    %15 = vector.extract_strided_slice %1 {offsets = [0, 2, 0], sizes = [16, 16, 4], strides = [1, 1, 1]} : vector<18x18x4xbf16> to vector<16x16x4xbf16>
    %16 = vector.shape_cast %15 : vector<16x16x4xbf16> to vector<256x4xbf16>
    %c2 = arith.constant 2 : index
    %c0_10 = arith.constant 0 : index
    %c0_11 = arith.constant 0 : index
    %17 = vector.load %arg3[%c2, %c0_10, %c0_11] : memref<9x4x128xbf16, #tpu.memory_space<vmem>>, vector<1x4x128xbf16>
    %18 = vector.shape_cast %17 : vector<1x4x128xbf16> to vector<4x128xbf16>
    %cst_12 = arith.constant dense<0.000000e+00> : vector<256x128xf32>
    %19 = tpu.matmul %16, %18, %cst_12 {dimension_numbers = #tpu.dot_dimension_numbers<[1], [0], [0], [1], [0, 0, 1, 1], [], []>} : vector<256x4xbf16>, vector<4x128xbf16>, vector<256x128xf32> -> vector<256x128xf32>
    %20 = arith.addf %14, %19 : vector<256x128xf32>
    %21 = vector.extract_strided_slice %1 {offsets = [1, 0, 0], sizes = [16, 16, 4], strides = [1, 1, 1]} : vector<18x18x4xbf16> to vector<16x16x4xbf16>
    %22 = vector.shape_cast %21 : vector<16x16x4xbf16> to vector<256x4xbf16>
    %c3 = arith.constant 3 : index
    %c0_13 = arith.constant 0 : index
    %c0_14 = arith.constant 0 : index
    %23 = vector.load %arg3[%c3, %c0_13, %c0_14] : memref<9x4x128xbf16, #tpu.memory_space<vmem>>, vector<1x4x128xbf16>
    %24 = vector.shape_cast %23 : vector<1x4x128xbf16> to vector<4x128xbf16>
    %cst_15 = arith.constant dense<0.000000e+00> : vector<256x128xf32>
    %25 = tpu.matmul %22, %24, %cst_15 {dimension_numbers = #tpu.dot_dimension_numbers<[1], [0], [0], [1], [0, 0, 1, 1], [], []>} : vector<256x4xbf16>, vector<4x128xbf16>, vector<256x128xf32> -> vector<256x128xf32>
    %26 = arith.addf %20, %25 : vector<256x128xf32>
    %27 = vector.extract_strided_slice %1 {offsets = [1, 1, 0], sizes = [16, 16, 4], strides = [1, 1, 1]} : vector<18x18x4xbf16> to vector<16x16x4xbf16>
    %28 = vector.shape_cast %27 : vector<16x16x4xbf16> to vector<256x4xbf16>
    %c4 = arith.constant 4 : index
    %c0_16 = arith.constant 0 : index
    %c0_17 = arith.constant 0 : index
    %29 = vector.load %arg3[%c4, %c0_16, %c0_17] : memref<9x4x128xbf16, #tpu.memory_space<vmem>>, vector<1x4x128xbf16>
    %30 = vector.shape_cast %29 : vector<1x4x128xbf16> to vector<4x128xbf16>
    %cst_18 = arith.constant dense<0.000000e+00> : vector<256x128xf32>
    %31 = tpu.matmul %28, %30, %cst_18 {dimension_numbers = #tpu.dot_dimension_numbers<[1], [0], [0], [1], [0, 0, 1, 1], [], []>} : vector<256x4xbf16>, vector<4x128xbf16>, vector<256x128xf32> -> vector<256x128xf32>
    %32 = arith.addf %26, %31 : vector<256x128xf32>
    %33 = vector.extract_strided_slice %1 {offsets = [1, 2, 0], sizes = [16, 16, 4], strides = [1, 1, 1]} : vector<18x18x4xbf16> to vector<16x16x4xbf16>
    %34 = vector.shape_cast %33 : vector<16x16x4xbf16> to vector<256x4xbf16>
    %c5 = arith.constant 5 : index
    %c0_19 = arith.constant 0 : index
    %c0_20 = arith.constant 0 : index
    %35 = vector.load %arg3[%c5, %c0_19, %c0_20] : memref<9x4x128xbf16, #tpu.memory_space<vmem>>, vector<1x4x128xbf16>
    %36 = vector.shape_cast %35 : vector<1x4x128xbf16> to vector<4x128xbf16>
    %cst_21 = arith.constant dense<0.000000e+00> : vector<256x128xf32>
    %37 = tpu.matmul %34, %36, %cst_21 {dimension_numbers = #tpu.dot_dimension_numbers<[1], [0], [0], [1], [0, 0, 1, 1], [], []>} : vector<256x4xbf16>, vector<4x128xbf16>, vector<256x128xf32> -> vector<256x128xf32>
    %38 = arith.addf %32, %37 : vector<256x128xf32>
    %39 = vector.extract_strided_slice %1 {offsets = [2, 0, 0], sizes = [16, 16, 4], strides = [1, 1, 1]} : vector<18x18x4xbf16> to vector<16x16x4xbf16>
    %40 = vector.shape_cast %39 : vector<16x16x4xbf16> to vector<256x4xbf16>
    %c6 = arith.constant 6 : index
    %c0_22 = arith.constant 0 : index
    %c0_23 = arith.constant 0 : index
    %41 = vector.load %arg3[%c6, %c0_22, %c0_23] : memref<9x4x128xbf16, #tpu.memory_space<vmem>>, vector<1x4x128xbf16>
    %42 = vector.shape_cast %41 : vector<1x4x128xbf16> to vector<4x128xbf16>
    %cst_24 = arith.constant dense<0.000000e+00> : vector<256x128xf32>
    %43 = tpu.matmul %40, %42, %cst_24 {dimension_numbers = #tpu.dot_dimension_numbers<[1], [0], [0], [1], [0, 0, 1, 1], [], []>} : vector<256x4xbf16>, vector<4x128xbf16>, vector<256x128xf32> -> vector<256x128xf32>
    %44 = arith.addf %38, %43 : vector<256x128xf32>
    %45 = vector.extract_strided_slice %1 {offsets = [2, 1, 0], sizes = [16, 16, 4], strides = [1, 1, 1]} : vector<18x18x4xbf16> to vector<16x16x4xbf16>
    %46 = vector.shape_cast %45 : vector<16x16x4xbf16> to vector<256x4xbf16>
    %c7 = arith.constant 7 : index
    %c0_25 = arith.constant 0 : index
    %c0_26 = arith.constant 0 : index
    %47 = vector.load %arg3[%c7, %c0_25, %c0_26] : memref<9x4x128xbf16, #tpu.memory_space<vmem>>, vector<1x4x128xbf16>
    %48 = vector.shape_cast %47 : vector<1x4x128xbf16> to vector<4x128xbf16>
    %cst_27 = arith.constant dense<0.000000e+00> : vector<256x128xf32>
    %49 = tpu.matmul %46, %48, %cst_27 {dimension_numbers = #tpu.dot_dimension_numbers<[1], [0], [0], [1], [0, 0, 1, 1], [], []>} : vector<256x4xbf16>, vector<4x128xbf16>, vector<256x128xf32> -> vector<256x128xf32>
    %50 = arith.addf %44, %49 : vector<256x128xf32>
    %51 = vector.extract_strided_slice %1 {offsets = [2, 2, 0], sizes = [16, 16, 4], strides = [1, 1, 1]} : vector<18x18x4xbf16> to vector<16x16x4xbf16>
    %52 = vector.shape_cast %51 : vector<16x16x4xbf16> to vector<256x4xbf16>
    %c8 = arith.constant 8 : index
    %c0_28 = arith.constant 0 : index
    %c0_29 = arith.constant 0 : index
    %53 = vector.load %arg3[%c8, %c0_28, %c0_29] : memref<9x4x128xbf16, #tpu.memory_space<vmem>>, vector<1x4x128xbf16>
    %54 = vector.shape_cast %53 : vector<1x4x128xbf16> to vector<4x128xbf16>
    %cst_30 = arith.constant dense<0.000000e+00> : vector<256x128xf32>
    %55 = tpu.matmul %52, %54, %cst_30 {dimension_numbers = #tpu.dot_dimension_numbers<[1], [0], [0], [1], [0, 0, 1, 1], [], []>} : vector<256x4xbf16>, vector<4x128xbf16>, vector<256x128xf32> -> vector<256x128xf32>
    %56 = arith.addf %50, %55 : vector<256x128xf32>
    %c0_31 = arith.constant 0 : index
    %c0_32 = arith.constant 0 : index
    %57 = vector.load %arg4[%c0_31, %c0_32] : memref<1x128xf32, #tpu.memory_space<vmem>>, vector<1x128xf32>
    %58 = vector.broadcast %57 : vector<1x128xf32> to vector<256x128xf32>
    %59 = arith.addf %56, %58 : vector<256x128xf32>
    %cst_33 = arith.constant 5.000000e-01 : f32
    %60 = vector.broadcast %cst_33 : f32 to vector<256x128xf32>
    %61 = arith.mulf %60, %59 : vector<256x128xf32>
    %cst_34 = arith.constant 0.707106769 : f32
    %62 = vector.broadcast %cst_34 : f32 to vector<256x128xf32>
    %63 = arith.mulf %59, %62 : vector<256x128xf32>
    %64 = math.erf %63 : vector<256x128xf32>
    %cst_35 = arith.constant 1.000000e+00 : f32
    %65 = vector.broadcast %cst_35 : f32 to vector<256x128xf32>
    %66 = arith.addf %65, %64 : vector<256x128xf32>
    %67 = arith.mulf %61, %66 : vector<256x128xf32>
    %c0_36 = arith.constant 0 : index
    %c0_37 = arith.constant 0 : index
    %c0_38 = arith.constant 0 : index
    %68 = vector.load %arg5[%c0_36, %c0_37, %c0_38] : memref<1x256x128xf32, #tpu.memory_space<vmem>>, vector<1x256x128xf32>
    %69 = vector.shape_cast %68 : vector<1x256x128xf32> to vector<256x128xf32>
    %70 = vector.shape_cast %67 : vector<256x128xf32> to vector<1x256x128xf32>
    tpu.vector_store %arg5[%c0_36, %c0_37, %c0_38], %70 {strides = array<i32>} : memref<1x256x128xf32, #tpu.memory_space<vmem>>, vector<1x256x128xf32>,
    return
  }
  func.func @transform_0(%arg0: i32, %arg1: i32) -> (i32, i32, i32, i32) {
    %c0_i32 = arith.constant 0 : i32
    %c0_i32_0 = arith.constant 0 : i32
    %c0_i32_1 = arith.constant 0 : i32
    %c0_i32_2 = arith.constant 0 : i32
    return %arg0, %c0_i32, %c0_i32_0, %c0_i32_1 : i32, i32, i32, i32
  }
  func.func @transform_1(%arg0: i32, %arg1: i32) -> (i32, i32, i32) {
    %c0_i32 = arith.constant 0 : i32
    %c0_i32_0 = arith.constant 0 : i32
    %c0_i32_1 = arith.constant 0 : i32
    return %c0_i32, %c0_i32_0, %arg1 : i32, i32, i32
  }
  func.func @transform_2(%arg0: i32, %arg1: i32) -> (i32, i32) {
    %c0_i32 = arith.constant 0 : i32
    %c0_i32_0 = arith.constant 0 : i32
    return %c0_i32, %arg1 : i32, i32
  }
  func.func @transform_3(%arg0: i32, %arg1: i32) -> (i32, i32, i32) {
    %c0_i32 = arith.constant 0 : i32
    %c0_i32_0 = arith.constant 0 : i32
    return %arg0, %c0_i32, %arg1 : i32, i32, i32
  }
}

</mosaic_0001>

<bundles_post_ra>
// kernel: conv_bn_gelu.1
= control target key start
LH: loop header
LB: loop body
LE: loop exit
PB: predicated region body
PF: predicated region fallthrough
CT: control target
= control target key end

     0   :  { %8 = vsyncpa [#allocation3], 0  ;;  %s5731_s0 = inlined_call_operand.vmem [shape: bf16[2,18,18,4], index: 0, kind: input, shape index: {}]   ;;  %s5732_s1 = inlined_call_operand.vmem [shape: bf16[9,4,128], index: 1, kind: input, shape index: {}]   ;;  %s5733_s2 = inlined_call_operand.vmem [shape: f32[1,128], index: 2, kind: input, shape index: {}]   ;;  %s5734_s3 = inlined_call_operand.hbm [shape: f32[2,256,128], index: 3, kind: output, shape index: {}]  }
   0x1   :  { %10 = vsyncpa [#allocation3 + $0x1], 0  ;;  %s4489_s12 = smov 0   ;;  %s4491_s13 = smov 0  }
   0x2   :  { %s4493_s14 = smov 0   ;;  %s4495_s15 = smov 0  }
   0x3   :  { %s4497_s16 = smov 0   ;;  %s4499_s17 = smov 0  }
   0x4 LB: > { %s3275_s18 = sadd.s32 4294967295, %s4464_s17   ;;  %s3276_s19 = sadd.s32 4294967294, %s4464_s17   ;;  %s4464_s17 = sphi %s4499_s17, %s16_s17   ;;  %s4460_s16 = sphi %s4497_s16, %s5818_s16   ;;  %s4456_s15 = sphi %s4495_s15, %s5817_s15   ;;  %s4452_s14 = sphi %s4493_s14, %s5816_s14   ;;  %s4448_s13 = sphi %s4491_s13, %s5815_s13   ;;  %s4444_s12 = sphi %s4489_s12, %s5814_s12  }
   0x5   : > { %s28_s20 = sadd.s32 1, %s4460_s16  ;;  %s115_s21 = sadd.s32 1, %s4452_s14 }
   0x6   : > { %p30_p0 = scmp.ge.s32.totalorder %s28_s20, 2  ;;  %p125_p1 = scmp.ne.s32.totalorder %s4452_s14, %s4448_s13 }
   0x7   : > { %p126_p2 = scmp.eq.s32.totalorder %s3275_s18, 1  ;;  %p131_p3 = scmp.ne.s32.totalorder %s4448_s13, %s4444_s12 }
   0x8   : > { %s5820_s20 = smov (%p30_p0, %s28_s20), 0  ;;  %p132_p5 = scmp.eq.s32.totalorder %s3276_s19, 1 }
   0x9   : > { %p4529_p4 = por %p126_p2, %p125_p1  ;;  %s110_s23 = ssub.s32 %s4460_s16, %s5820_s20 }
   0xa   : > { %p3281_p6 = scmp.ge.s32.totalorder %s4464_s17, 1  ;;  %p113_p7 = scmp.eq.s32.totalorder %s110_s23, 0 }
   0xb   : > { %p4536_p8 = por %p132_p5, %p131_p3  ;;  %p171_p9 = scmp.lt.s32.totalorder %s4464_s17, 3 }
   0xc   : > { %s4542_s25 = scalar_select %p113_p7, %s4452_s14, %s115_s21  }
   0xd   : > { %p172_p10 = pnand %p3281_p6, %p171_p9 }
   0xf   : > { %175 = sbr.rel (%p172_p10) target bundleno = 593 (0x251), region = 32 }
  0x16   : > { %v3284_v0 = vld [vmem:[%s5732_s1 + $0x2] sm:$0x3]  ;;  %vm756_vm0 = vcmask 1041408   ;;  %v3416_v1 = vld [vmem:[%s5732_s1 + $0x8] sm:$0x3]  ;;  %p202_p11 = scmp.lt.s32.totalorder %s4456_s15, 1 }
  0x17   : > { %4232 = vmatprep.subr.msk.bf16.mxu1 %vm756_vm0, %v3284_v0  ;;  %4236 = vmatprep.subr.msk.bf16.mxu0 %vm756_vm0, %v3416_v1  ;;  %v758_v2 = vsel %vm756_vm0, %v3284_v0, 0  ;;  %v4555_v3 = vsel %vm756_vm0, %v3416_v1, 0  ;;  %v269_v4 = vld [vmem:[%s5732_s1] sm:$0x3]  ;;  %v3435_v5 = vld [vmem:[%s5732_s1 + $0xa] sm:$0x3] }
  0x18   : > { %5768 = vst [vmem:[#allocation5_spill] sm:$0xff] %v4555_v3  ;;  %3669 = vmatpush3.bf16.msra.mxu1 %v758_v2  ;;  %3805 = vmatpush3.bf16.msra.mxu0 %v4555_v3  ;;  %s203_s30 = scalar_select %p202_p11, %s4456_s15, 1  ;;  %vm270_vm1 = vsmask.f32 3328  ;;  %vm271_vm2 = vsmask.f32 7440 }
  0x19   : > { %4233 = vmatprep.subr.msk.bf16.mxu1 %vm756_vm0, %v269_v4  ;;  %4238 = vmatprep.subr.msk.bf16.mxu0 %vm756_vm0, %v3435_v5  ;;  %v4573_v6 = vsel %vm756_vm0, %v269_v4, 0  ;;  %v4576_v7 = vsel %vm756_vm0, %v3435_v5, 0  ;;  %v4581_v8 = vld [vmem:[%s5732_s1 + $0xc] sm:$0x3]  ;;  %vm707_vm3 = vcmask 31744   ;;  %vm4617_vm4 = vmor %vm270_vm1, %vm271_vm2  ;;  %vm1229_vm5 = vcmask 1042432  }
  0x1a   : > { %s4242_s8 = smul.u32 216, %s203_s30  ;;  %v4605_v20 = vsel %vm756_vm0, %v4581_v8, 0  ;;  %vm1230_vm6 = vcmask 1046532   ;;  %s199_s9 = sand.u32 1, %s4448_s13  }
  0x1b   : > { %vm4798_vm7 = vmor %vm1229_vm5, %vm1230_vm6  ;;  %s3282_s10 = sshll.u32 %s199_s9, 8  ;;  %s3514_s18 = sshll.u32 %s4456_s15, 12 }
  0x1c   : > { %s4570_s11 = scalar_lea.vmem %s5731_s0, %s4242_s8  ;;  %s5677_s26 = scalar_lea.hbm %s5734_s3, %s3514_s18 }
  0x1d   : > { %v4584_v9 = vld [vmem:[%s4570_s11] sm:$0xf]  ;;  %v4587_v10 = vld [vmem:[%s4570_s11 + $0x4] sm:$0xf]  ;;  %v217_v11 = vld [vmem:[%s4570_s11 + $0x8] sm:$0x1] }
  0x1e   : > { %v274_v12 = vshrl.u32 %v4584_v9, 16  ;;  %v277_v13 = vshll.u32 %v4584_v9, 16  ;;  %v283_v14 = vshll.u32 %v4587_v10, 16  ;;  %v287_v15 = vshrl.u32 %v4587_v10, 16  ;;  %v4595_v16 = vld [vmem:[%s4570_s11 + $0xc] sm:$0xf] }
  0x1f   : > { %v293_v17 = vshll.u32 %v217_v11, 16  ;;  %v4598_v18 = vld [vmem:[%s4570_s11 + $0x10] sm:$0xf]  ;;  %v4601_v19 = vld [vmem:[%s4570_s11 + $0x14] sm:$0x1]  ;;  %v298_v26 = vshrl.u32 %v4595_v16, 16 }
  0x20   : > { %v276_v21 = vrot.slane %v274_v12, 4  ;;  %v279_v22 = vrot.slane %v277_v13, 5  ;;  %v285_v23 = vrot.slane %v283_v14, 5  ;;  %v289_v24 = vrot.slane %v287_v15, 4  ;;  %v4613_v33 = vld [vmem:[%s4570_s11 + $0x18] sm:$0xf] }
  0x21   : > { %v295_v25 = vrot.slane %v293_v17, 5  ;;  %v301_v27 = vshll.u32 %v4595_v16, 16  ;;  %v307_v28 = vshll.u32 %v4598_v18, 16  ;;  %v311_v31 = vshrl.u32 %v4598_v18, 16  ;;  %v4626_v39 = vld [vmem:[%s4570_s11 + $0x1c] sm:$0xf] }
  0x22   : > { %v280_v29 = vor.u32 %v279_v22, %v276_v21  ;;  %v290_v30 = vor.u32 %v289_v24, %v285_v23  ;;  %v317_v32 = vshll.u32 %v4601_v19, 16  ;;  %v300_v35 = vrot.slane %v298_v26, 4  ;;  %v4630_v46 = vld [vmem:[%s4570_s11 + $0x20] sm:$0x1]  ;;  %v4640_v57 = vld [vmem:[%s4570_s11 + $0x24] sm:$0xf] }
  0x23   : > { %v303_v36 = vrot.slane %v301_v27, 5  ;;  %v309_v37 = vrot.slane %v307_v28, 5  ;;  %v4623_v38 = vcombine.low %v4595_v16, %v4598_v18  ;;  %v313_v42 = vrot.slane %v311_v31, 4  ;;  %v4645_v62 = vld [vmem:[%s4570_s11 + $0x28] sm:$0xf]  ;;  %s5685_s15 = scalar_lea.sflag [#allocation3], %s199_s9 }
  0x24   : > { %v281_v40 = vrot.slane %v280_v29, 4  ;;  %v291_v41 = vrot.slane %v290_v30, 4  ;;  %v319_v43 = vrot.slane %v317_v32, 5  ;;  %v1244_v45 = vrot.slane %v4601_v19, 5  ;;  %v4653_v4 = vld [vmem:[%s4570_s11 + $0x2c] sm:$0x1] }
  0x25   : > { %v304_v44 = vor.u32 %v303_v36, %v300_v35  ;;  %v322_v47 = vshrl.u32 %v4613_v33, 16  ;;  %v325_v48 = vshll.u32 %v4613_v33, 16  ;;  %v314_v51 = vor.u32 %v313_v42, %v309_v37  ;;  %v4659_v14 = vld [vmem:[%s4570_s11 + $0x30] sm:$0xf]  ;;  %v4671_v28 = vld [vmem:[%s4570_s11 + $0x34] sm:$0xf] }
  0x26   : > { %v286_v49 = vsel %vm4617_vm4, %v281_v40, %v285_v23  ;;  %v296_v50 = vsel %vm4617_vm4, %v291_v41, %v295_v25  ;;  %v331_v52 = vshll.u32 %v4626_v39, 16  ;;  %v335_v60 = vshrl.u32 %v4626_v39, 16  ;;  %v4666_v23 = vld [vmem:[%s5732_s1 + $0x4] sm:$0x3]  ;;  %v4678_v32 = vld [vmem:[%s4570_s11 + $0x38] sm:$0x1] }
  0x27   : > { %v3285_v53 = vcombine.low %v286_v49, %v296_v50  ;;  %v305_v54 = vrot.slane %v304_v44, 4  ;;  %v324_v55 = vrot.slane %v322_v47, 4  ;;  %v327_v56 = vrot.slane %v325_v48, 5  ;;  %v4686_v48 = vld [vmem:[%s4570_s11 + $0x3c] sm:$0xf]  ;;  %s4466_s28 = smov [#allocation2]  }
  0x28   : > { %v315_v58 = vrot.slane %v314_v51, 4  ;;  %v333_v59 = vrot.slane %v331_v52, 5  ;;  %v341_v61 = vshll.u32 %v4630_v46, 16  ;;  %v1248_v1 = vrot.slane %v4626_v39, 5  ;;  %v4694_v52 = vld [vmem:[%s4570_s11 + $0x40] sm:$0xf] }
  0x29   : > { %3670 = vmatprep.mubr.msk.bf16.mxu1 %vm707_vm3, %v3285_v53  ;;  %v310_v63 = vsel %vm4617_vm4, %v305_v54, %v309_v37  ;;  %v328_v0 = vor.u32 %v327_v56, %v324_v55  ;;  %v1251_v2 = vrot.slane %v4630_v46, 5  ;;  %v337_v11 = vrot.slane %v335_v60, 4  ;;  %s4390_s29 = sshll.u32 %s4466_s28, 4  ;;  %s4391_s29 = int_to_ptr.vmem [resolvable:$false] %s4390_s29 }
  0x2a   : > { %v320_v5 = vsel %vm4617_vm4, %v315_v58, %v319_v43  ;;  %v343_v12 = vrot.slane %v341_v61, 5  ;;  %v346_v13 = vshrl.u32 %v4640_v57, 16  ;;  %v349_v21 = vshll.u32 %v4640_v57, 16  ;;  %s4392_s30 = scalar_lea.vmem %s4391_s29, 8192 }
  0x2b   : > { %v3286_v15 = vcombine.low %v310_v63, %v320_v5  ;;  %v329_v17 = vrot.slane %v328_v0, 4  ;;  %v355_v22 = vshll.u32 %v4645_v62, 16  ;;  %v338_v24 = vor.u32 %v337_v11, %v333_v59  ;;  %v4706_v5 = vld [vmem:[%s4570_s11 + $0x44] sm:$0x1] }
  0x2c   : > { %v348_v25 = vrot.slane %v346_v13, 4  ;;  %v359_v26 = vshrl.u32 %v4645_v62, 16  ;;  %v365_v27 = vshll.u32 %v4653_v4, 16  ;;  %v351_v30 = vrot.slane %v349_v21, 5  ;;  %v4711_v13 = vld [vmem:[%s4570_s11 + $0x48] sm:$0xf] }
  0x2d   : > { %3806 = vmatprep.mubr.msk.bf16.mxu0 %vm707_vm3, %v3286_v15  ;;  %3671 = vmatmul.mubr.msk.bf16.vlgmr.msra.gmra.mrb[0].mxu1 %vm707_vm3, %v3286_v15  ;;  %v334_v29 = vsel %vm4617_vm4, %v329_v17, %v333_v59  ;;  %v357_v31 = vrot.slane %v355_v22, 5  ;;  %v370_v35 = vshrl.u32 %v4659_v14, 16  ;;  %v339_v36 = vrot.slane %v338_v24, 4  ;;  %v4718_v24 = vld [vmem:[%s4570_s11 + $0x4c] sm:$0xf] }
  0x2e   : > { %3703 = vmatpush3.bf16.msra.mxu1 %v4573_v6  ;;  %v361_v37 = vrot.slane %v359_v26, 4  ;;  %v367_v40 = vrot.slane %v365_v27, 5  ;;  %v373_v41 = vshll.u32 %v4659_v14, 16  ;;  %v352_v42 = vor.u32 %v351_v30, %v348_v25 }
  0x2f   : > { %v372_v43 = vrot.slane %v370_v35, 4  ;;  %v379_v44 = vshll.u32 %v4671_v28, 16  ;;  %v383_v47 = vshrl.u32 %v4671_v28, 16  ;;  %4234 = vmatprep.subr.msk.bf16.mxu1 %vm756_vm0, %v4666_v23  ;;  %v344_v49 = vsel %vm4617_vm4, %v339_v36, %v343_v12 }
  0x30   : > { %v362_v6 = vor.u32 %v361_v37, %v357_v31  ;;  %v375_v50 = vrot.slane %v373_v41, 5  ;;  %v389_v51 = vshll.u32 %v4678_v32, 16  ;;  %v4696_v53 = vcombine.low %v334_v29, %v344_v49 }
  0x31   : > { %v353_v54 = vrot.slane %v352_v42, 4  ;;  %v381_v55 = vrot.slane %v379_v44, 5  ;;  %v385_v56 = vrot.slane %v383_v47, 4  ;;  %v394_v61 = vshrl.u32 %v4686_v48, 16  ;;  %v4740_v42 = vld [vmem:[%s4570_s11 + $0x54] sm:$0xf] }
  0x32   : > { %5771 = vst [vmem:[#allocation6_spill] sm:$0xff] %v4696_v53  ;;  %v363_v58 = vrot.slane %v362_v6, 4  ;;  %v376_v59 = vor.u32 %v375_v50, %v372_v43  ;;  %v391_v60 = vrot.slane %v389_v51, 5  ;;  %3807 = vmatmul.mubr.msk.bf16.vlgmr.msra.gmra.mrb[0].mxu0 %vm707_vm3, %v4696_v53  ;;  %3674 = vmatprep.mubr.msk.bf16.mxu1 %vm707_vm3, %v4696_v53  ;;  %v397_v11 = vshll.u32 %v4686_v48, 16  ;;  %5773 = vst [vmem:[#allocation8_spill] sm:$0xff] %v4740_v42 }
  0x33   : > { %v358_v63 = vsel %vm4617_vm4, %v353_v54, %v357_v31  ;;  %v386_v0 = vor.u32 %v385_v56, %v381_v55  ;;  %v403_v12 = vshll.u32 %v4694_v52, 16  ;;  %3839 = vmatpush3.bf16.msra.mxu0 %v4576_v7  ;;  %v396_v21 = vrot.slane %v394_v61, 4  ;;  %v4745_v6 = vld [vmem:[%s4570_s11 + $0x58] sm:$0xf] }
  0x34   : > { %v368_v15 = vsel %vm4617_vm4, %v363_v58, %v367_v40  ;;  %v377_v17 = vrot.slane %v376_v59, 4  ;;  %v407_v22 = vshrl.u32 %v4694_v52, 16  ;;  %v399_v27 = vrot.slane %v397_v11, 5  ;;  %4239 = vmatprep.subr.msk.bf16.mxu0 %vm756_vm0, %v4581_v8  ;;  %v4735_v8 = vld [vmem:[%s4570_s11 + $0x50] sm:$0x1] }
  0x35   : > { %v4720_v25 = vcombine.low %v358_v63, %v368_v15  ;;  %v387_v26 = vrot.slane %v386_v0, 4  ;;  %v405_v29 = vrot.slane %v403_v12, 5  ;;  %v413_v31 = vshll.u32 %v4706_v5, 16  ;;  %v4758_v11 = vld [vmem:[%s4570_s11 + $0x5c] sm:$0x1] }
  0x36   : > { %v382_v7 = vsel %vm4617_vm4, %v377_v17, %v381_v55  ;;  %v409_v30 = vrot.slane %v407_v22, 4  ;;  %v418_v35 = vshrl.u32 %v4711_v13, 16  ;;  %v400_v37 = vor.u32 %v399_v27, %v396_v21  ;;  %v4762_v15 = vld [vmem:[%s4570_s11 + $0x60] sm:$0xf]  ;;  %v4767_v27 = vld [vmem:[%s4570_s11 + $0x64] sm:$0xf] }
  0x37   : > { %5772 = vst [vmem:[#allocation7_spill] sm:$0xff] %v4720_v25  ;;  %3810 = vmatprep.mubr.msk.bf16.mxu0 %vm707_vm3, %v4720_v25  ;;  %3675 = vmatmul.mubr.msk.bf16.gmra.mrb[4].mxu1 %vm707_vm3, %v4720_v25  ;;  %v392_v36 = vsel %vm4617_vm4, %v387_v26, %v391_v60  ;;  %v421_v40 = vshll.u32 %v4711_v13, 16  ;;  %v427_v41 = vshll.u32 %v4718_v24, 16  ;;  %v415_v47 = vrot.slane %v413_v31, 5  ;;  %v4979_v25 = vld [vmem:[%s4570_s11 + $0xa8] sm:$0xf] }
  0x38   : > { %v4742_v43 = vcombine.low %v382_v7, %v392_v36  ;;  %v410_v44 = vor.u32 %v409_v30, %v405_v29  ;;  %v420_v49 = vrot.slane %v418_v35, 4  ;;  %v401_v50 = vrot.slane %v400_v37, 4 }
  0x39   : > { %v423_v51 = vrot.slane %v421_v40, 5  ;;  %v429_v54 = vrot.slane %v427_v41, 5  ;;  %v431_v55 = vshrl.u32 %v4718_v24, 16  ;;  %v437_v58 = vshll.u32 %v4735_v8, 16 }
  0x3a   : > { %5774 = vst [vmem:[#allocation9_spill] sm:$0xff] %v4742_v43  ;;  %3678 = vmatprep.mubr.msk.bf16.mxu1 %vm707_vm3, %v4742_v43  ;;  %v411_v56 = vrot.slane %v410_v44, 4  ;;  %v442_v59 = vshrl.u32 %v4740_v42, 16  ;;  %v445_v60 = vshll.u32 %v4740_v42, 16  ;;  %3811 = vmatmul.mubr.msk.bf16.gmra.mrb[4].mxu0 %vm707_vm3, %v4742_v43  ;;  %v406_v61 = vsel %vm4617_vm4, %v401_v50, %v405_v29 }
  0x3b   : > { %v424_v63 = vor.u32 %v423_v51, %v420_v49  ;;  %v433_v0 = vrot.slane %v431_v55, 4  ;;  %v451_v12 = vshll.u32 %v4745_v6, 16  ;;  %v439_v21 = vrot.slane %v437_v58, 5 }
  0x3c   : > { %v416_v17 = vsel %vm4617_vm4, %v411_v56, %v415_v47  ;;  %v444_v22 = vrot.slane %v442_v59, 4  ;;  %v447_v26 = vrot.slane %v445_v60, 5  ;;  %v455_v36 = vshrl.u32 %v4745_v6, 16  ;;  %v4781_v47 = vld [vmem:[%s4570_s11 + $0x68] sm:$0x1] }
  0x3d   : > { %v4769_v7 = vcombine.low %v406_v61, %v416_v17  ;;  %v425_v29 = vrot.slane %v424_v63, 4  ;;  %v434_v30 = vor.u32 %v433_v0, %v429_v54  ;;  %v453_v31 = vrot.slane %v451_v12, 5 }
  0x3e   : > { %v448_v35 = vor.u32 %v447_v26, %v444_v22  ;;  %v461_v37 = vshll.u32 %v4758_v11, 16  ;;  %v466_v40 = vshrl.u32 %v4762_v15, 16  ;;  %v469_v49 = vshll.u32 %v4762_v15, 16 }
  0x3f   : > { %5775 = vst [vmem:[#allocation10_spill] sm:$0xff] %v4769_v7  ;;  %3814 = vmatprep.mubr.msk.bf16.mxu0 %vm707_vm3, %v4769_v7  ;;  %3679 = vmatmul.mubr.msk.bf16.gmra.mrb[8].mxu1 %vm707_vm3, %v4769_v7  ;;  %v430_v41 = vsel %vm4617_vm4, %v425_v29, %v429_v54  ;;  %v435_v44 = vrot.slane %v434_v30, 4  ;;  %v475_v50 = vshll.u32 %v4767_v27, 16  ;;  %v457_v55 = vrot.slane %v455_v36, 4  ;;  %v4789_v54 = vld [vmem:[%s4570_s11 + $0x6c] sm:$0xf] }
  0x40   : > { %v449_v51 = vrot.slane %v448_v35, 4  ;;  %v463_v56 = vrot.slane %v461_v37, 5  ;;  %v468_v58 = vrot.slane %v466_v40, 4  ;;  %v471_v60 = vrot.slane %v469_v49, 5  ;;  %v4805_v36 = vld [vmem:[%s4570_s11 + $0x70] sm:$0xf] }
  0x41   : > { %v440_v59 = vsel %vm4617_vm4, %v435_v44, %v439_v21  ;;  %v477_v61 = vrot.slane %v475_v50, 5  ;;  %v479_v63 = vshrl.u32 %v4767_v27, 16  ;;  %v458_v17 = vor.u32 %v457_v55, %v453_v31  ;;  %v4956_v7 = vld [vmem:[%s4570_s11 + $0xa0] sm:$0xf] }
  0x42   : > { %v4791_v0 = vcombine.low %v430_v41, %v440_v59  ;;  %v454_v12 = vsel %vm4617_vm4, %v449_v51, %v453_v31  ;;  %v485_v22 = vshll.u32 %v4781_v47, 16  ;;  %v472_v21 = vor.u32 %v471_v60, %v468_v58  ;;  %v4818_v51 = vld [vmem:[%s4570_s11 + $0x74] sm:$0x1] }
  0x43   : > { %v481_v29 = vrot.slane %v479_v63, 4  ;;  %v3350_v30 = vrot.slane %v4595_v16, 9  ;;  %v1241_v35 = vrot.slane %v4598_v18, 5  ;;  %v459_v31 = vrot.slane %v458_v17, 4 }
  0x44   : > { %5776 = vst [vmem:[#allocation11_spill] sm:$0xff] %v4791_v0  ;;  %3815 = vmatmul.mubr.msk.bf16.gmra.mrb[8].mxu0 %vm707_vm3, %v4791_v0  ;;  %3682 = vmatprep.mubr.msk.bf16.mxu1 %vm707_vm3, %v4791_v0  ;;  %v487_v37 = vrot.slane %v485_v22, 5  ;;  %v490_v40 = vshrl.u32 %v4789_v54, 16  ;;  %v493_v41 = vshll.u32 %v4789_v54, 16  ;;  %v473_v44 = vrot.slane %v472_v21, 4 }
  0x45   : > { %v482_v49 = vor.u32 %v481_v29, %v477_v61  ;;  %v1242_v16 = vsel %vm4798_vm7, %v3350_v30, %v1241_v35  ;;  %v1243_v18 = vrot.slane %v1241_v35, 4  ;;  %v464_v50 = vsel %vm4617_vm4, %v459_v31, %v463_v56  ;;  %v4830_v56 = vld [vmem:[%s4570_s11 + $0x78] sm:$0xf]  ;;  %v4846_v31 = vld [vmem:[%s4570_s11 + $0x7c] sm:$0xf] }
  0x46   : > { %v492_v55 = vrot.slane %v490_v40, 4  ;;  %v495_v58 = vrot.slane %v493_v41, 5  ;;  %v499_v59 = vshll.u32 %v4805_v36, 16  ;;  %v4821_v60 = vcombine.low %v454_v12, %v464_v50 }
  0x47   : > { %v478_v63 = vsel %vm4617_vm4, %v473_v44, %v477_v61  ;;  %v483_v17 = vrot.slane %v482_v49, 4  ;;  %v1245_v22 = vsel %vm4798_vm7, %v1243_v18, %v1244_v45  ;;  %v503_v35 = vshrl.u32 %v4805_v36, 16  ;;  %v4851_v49 = vld [vmem:[%s4570_s11 + $0x80] sm:$0x1] }
  0x48   : > { %5779 = vst [vmem:[#allocation12_spill] sm:$0xff] %v4821_v60  ;;  %v4832_v21 = vcombine.low %v1242_v16, %v1245_v22  ;;  %v496_v29 = vor.u32 %v495_v58, %v492_v55  ;;  %v501_v30 = vrot.slane %v499_v59, 5  ;;  %3818 = vmatprep.mubr.msk.bf16.mxu0 %vm707_vm3, %v4821_v60  ;;  %3683 = vmatmul.mubr.msk.bf16.gmra.mrb[12].mxu1 %vm707_vm3, %v4821_v60  ;;  %v509_v45 = vshll.u32 %v4818_v51, 16  ;;  %v4949_v60 = vld [vmem:[%s4570_s11 + $0x9c] sm:$0xf] }
  0x49   : > { %v488_v19 = vsel %vm4617_vm4, %v483_v17, %v487_v37  ;;  %v3351_v61 = vrot.slane %v4613_v33, 9  ;;  %v1250_v12 = vrot.slane %v1248_v1, 4  ;;  %v505_v44 = vrot.slane %v503_v35, 4 }
  0x4a   : > { %5780 = vst [vmem:[#allocation13_spill] sm:$0xff] %v4832_v21  ;;  %v4848_v40 = vcombine.low %v478_v63, %v488_v19  ;;  %v497_v41 = vrot.slane %v496_v29, 4  ;;  %v514_v16 = vshrl.u32 %v4830_v56, 16  ;;  %v511_v18 = vrot.slane %v509_v45, 5  ;;  %v4877_v29 = vld [vmem:[%s4570_s11 + $0x84] sm:$0xf] }
  0x4b   : > { %v1249_v37 = vsel %vm4798_vm7, %v3351_v61, %v1248_v1  ;;  %v1252_v50 = vsel %vm4798_vm7, %v1250_v12, %v1251_v2  ;;  %v517_v55 = vshll.u32 %v4830_v56, 16  ;;  %v506_v59 = vor.u32 %v505_v44, %v501_v30 }
  0x4c   : > { %5781 = vst [vmem:[#allocation14_spill] sm:$0xff] %v4848_v40  ;;  %3819 = vmatmul.mubr.msk.bf16.gmra.mrb[12].mxu0 %vm707_vm3, %v4848_v40  ;;  %3686 = vmatprep.mubr.msk.bf16.mxu1 %vm707_vm3, %v4848_v40  ;;  %v502_v58 = vsel %vm4617_vm4, %v497_v41, %v501_v30  ;;  %v4869_v63 = vcombine.low %v1249_v37, %v1252_v50  ;;  %v516_v1 = vrot.slane %v514_v16, 4  ;;  %v523_v2 = vshll.u32 %v4846_v31, 16  ;;  %v4883_v16 = vld [vmem:[%s4570_s11 + $0x88] sm:$0xf] }
  0x4d   : > { %3840 = vmatprep.mubr.msk.bf16.mxu0 %vm707_vm3, %v4832_v21  ;;  %v519_v46 = vrot.slane %v517_v55, 5  ;;  %v527_v17 = vshrl.u32 %v4846_v31, 16  ;;  %v533_v22 = vshll.u32 %v4851_v49, 16  ;;  %v507_v35 = vrot.slane %v506_v59, 4 }
  0x4e   : > { %5782 = vst [vmem:[#allocation15_spill] sm:$0xff] %v4869_v63  ;;  %v3352_v30 = vrot.slane %v4640_v57, 9  ;;  %v1255_v19 = vrot.slane %v4645_v62, 5  ;;  %v1258_v45 = vrot.slane %v4653_v4, 5  ;;  %v525_v12 = vrot.slane %v523_v2, 5 }
  0x4f   : > { %v520_v61 = vor.u32 %v519_v46, %v516_v1  ;;  %v529_v41 = vrot.slane %v527_v17, 4  ;;  %v535_v44 = vrot.slane %v533_v22, 5  ;;  %v512_v37 = vsel %vm4617_vm4, %v507_v35, %v511_v18  ;;  %v4893_v1 = vld [vmem:[%s4570_s11 + $0x8c] sm:$0x1] }
  0x50   : > { %v1256_v50 = vsel %vm4798_vm7, %v3352_v30, %v1255_v19  ;;  %v1257_v55 = vrot.slane %v1255_v19, 4  ;;  %v538_v59 = vshrl.u32 %v4877_v29, 16  ;;  %v4890_v3 = vcombine.low %v502_v58, %v512_v37 }
  0x51   : > { %v521_v40 = vrot.slane %v520_v61, 4  ;;  %v530_v4 = vor.u32 %v529_v41, %v525_v12  ;;  %v541_v46 = vshll.u32 %v4877_v29, 16  ;;  %v547_v18 = vshll.u32 %v4883_v16, 16  ;;  %v4907_v61 = vld [vmem:[%s4570_s11 + $0x90] sm:$0xf] }
  0x52   : > { %5783 = vst [vmem:[#allocation16_spill] sm:$0xff] %v4890_v3  ;;  %v1259_v2 = vsel %vm4798_vm7, %v1257_v55, %v1258_v45  ;;  %v540_v17 = vrot.slane %v538_v59, 4  ;;  %v551_v22 = vshrl.u32 %v4883_v16, 16  ;;  %3687 = vmatmul.mubr.msk.bf16.gmra.mrb[16].mxu1 %vm707_vm3, %v4890_v3  ;;  %v4912_v45 = vld [vmem:[%s5732_s1 + $0xe] sm:$0x3]  ;;  %v1262_v59 = vrot.slane %v4671_v28, 5 }
  0x53   : > { %v526_v58 = vsel %vm4617_vm4, %v521_v40, %v525_v12  ;;  %v531_v35 = vrot.slane %v530_v4, 4  ;;  %v4904_v30 = vcombine.low %v1256_v50, %v1259_v2  ;;  %v543_v19 = vrot.slane %v541_v46, 5  ;;  %5785 = vst [vmem:[#allocation18_spill] sm:$0xff] %v4912_v45  ;;  %v4926_v46 = vld [vmem:[%s4570_s11 + $0x94] sm:$0xf] }
  0x54   : > { %3841 = vmatmul.mubr.msk.bf16.vlgmr.msra.gmra.mrb[0].mxu0 %vm707_vm3, %v4869_v63  ;;  %v549_v41 = vrot.slane %v547_v18, 5  ;;  %v553_v37 = vrot.slane %v551_v22, 4  ;;  %v557_v40 = vshll.u32 %v4893_v1, 16  ;;  %v3353_v12 = vrot.slane %v4659_v14, 9  ;;  %v4931_v3 = vld [vmem:[%s4570_s11 + $0x98] sm:$0x1] }
  0x55   : > { %5784 = vst [vmem:[#allocation17_spill] sm:$0xff] %v4904_v30  ;;  %3873 = vmatpush3.bf16.msra.mxu0 %v4605_v20  ;;  %v536_v50 = vsel %vm4617_vm4, %v531_v35, %v535_v44  ;;  %3844 = vmatprep.mubr.msk.bf16.mxu0 %vm707_vm3, %v4904_v30  ;;  %v544_v55 = vor.u32 %v543_v19, %v540_v17  ;;  %v1265_v4 = vrot.slane %v4678_v32, 5  ;;  %v562_v20 = vshrl.u32 %v4907_v61, 16 }
  0x56   : > { %v4928_v2 = vcombine.low %v526_v58, %v536_v50  ;;  %v554_v18 = vor.u32 %v553_v37, %v549_v41  ;;  %v559_v22 = vrot.slane %v557_v40, 5  ;;  %4240 = vmatprep.subr.msk.bf16.mxu0 %vm756_vm0, %v4912_v45  ;;  %v1263_v17 = vsel %vm4798_vm7, %v3353_v12, %v1262_v59 }
  0x57   : > { %v545_v44 = vrot.slane %v544_v55, 4  ;;  %v1264_v35 = vrot.slane %v1262_v59, 4  ;;  %v565_v32 = vshll.u32 %v4907_v61, 16  ;;  %v564_v19 = vrot.slane %v562_v20, 4 }
  0x58   : > { %5786 = vst [vmem:[#allocation19_spill] sm:$0xff] %v4928_v2  ;;  %3690 = vmatprep.mubr.msk.bf16.mxu1 %vm707_vm3, %v4928_v2  ;;  %v555_v58 = vrot.slane %v554_v18, 4  ;;  %v571_v37 = vshll.u32 %v4926_v46, 16  ;;  %v575_v40 = vshrl.u32 %v4926_v46, 16  ;;  %v581_v59 = vshll.u32 %v4931_v3, 16 }
  0x59   : > { %v550_v50 = vsel %vm4617_vm4, %v545_v44, %v549_v41  ;;  %v1266_v55 = vsel %vm4798_vm7, %v1264_v35, %v1265_v4  ;;  %v567_v12 = vrot.slane %v565_v32, 5  ;;  %v3354_v4 = vrot.slane %v4686_v48, 9 }
  0x5a   : > { %v560_v2 = vsel %vm4617_vm4, %v555_v58, %v559_v22  ;;  %v4953_v18 = vcombine.low %v1263_v17, %v1266_v55  ;;  %v573_v20 = vrot.slane %v571_v37, 5  ;;  %v577_v0 = vrot.slane %v575_v40, 4  ;;  %v4969_v58 = vld [vmem:[%s4570_s11 + $0xa4] sm:$0x1] }
  0x5b   : > { %v4958_v43 = vcombine.low %v550_v50, %v560_v2  ;;  %v568_v41 = vor.u32 %v567_v12, %v564_v19  ;;  %v583_v44 = vrot.slane %v581_v59, 5  ;;  %v1269_v32 = vrot.slane %v4694_v52, 5 }
  0x5c   : > { %5787 = vst [vmem:[#allocation20_spill] sm:$0xff] %v4953_v18  ;;  %3845 = vmatmul.mubr.msk.bf16.gmra.mrb[4].mxu0 %vm707_vm3, %v4953_v18  ;;  %v578_v35 = vor.u32 %v577_v0, %v573_v20  ;;  %v1272_v22 = vrot.slane %v4706_v5, 5  ;;  %v586_v17 = vshrl.u32 %v4949_v60, 16  ;;  %v589_v19 = vshll.u32 %v4949_v60, 16 }
  0x5d   : > { %5788 = vst [vmem:[#allocation21_spill] sm:$0xff] %v4958_v43  ;;  %3691 = vmatmul.mubr.msk.bf16.gmra.mrb[20].mxu1 %vm707_vm3, %v4958_v43  ;;  %v569_v2 = vrot.slane %v568_v41, 4  ;;  %v595_v37 = vshll.u32 %v4956_v7, 16  ;;  %v599_v0 = vshrl.u32 %v4956_v7, 16  ;;  %v1270_v5 = vsel %vm4798_vm7, %v3354_v4, %v1269_v32 }
  0x5e   : > { %v579_v40 = vrot.slane %v578_v35, 4  ;;  %v1271_v50 = vrot.slane %v1269_v32, 4  ;;  %v588_v55 = vrot.slane %v586_v17, 4  ;;  %v591_v59 = vrot.slane %v589_v19, 5  ;;  %v4988_v32 = vld [vmem:[%s4570_s11 + $0xac] sm:$0xf] }
  0x5f   : > { %v574_v12 = vsel %vm4617_vm4, %v569_v2, %v573_v20  ;;  %v597_v41 = vrot.slane %v595_v37, 5  ;;  %v601_v43 = vrot.slane %v599_v0, 4  ;;  %v605_v35 = vshll.u32 %v4969_v58, 16 }
  0x60   : > { %v584_v53 = vsel %vm4617_vm4, %v579_v40, %v583_v44  ;;  %v1273_v18 = vsel %vm4798_vm7, %v1271_v50, %v1272_v22  ;;  %v3355_v4 = vrot.slane %v4711_v13, 9  ;;  %v592_v2 = vor.u32 %v591_v59, %v588_v55 }
  0x61   : > { %v4990_v17 = vcombine.low %v574_v12, %v584_v53  ;;  %v4992_v20 = vcombine.low %v1270_v5, %v1273_v18  ;;  %v602_v19 = vor.u32 %v601_v43, %v597_v41  ;;  %v607_v37 = vrot.slane %v605_v35, 5  ;;  %v5002_v18 = vld [vmem:[%s4570_s11 + $0xb0] sm:$0x1] }
  0x62   : > { %v1276_v0 = vrot.slane %v4718_v24, 5  ;;  %v1279_v44 = vrot.slane %v4735_v8, 5  ;;  %v610_v22 = vshrl.u32 %v4979_v25, 16  ;;  %v593_v53 = vrot.slane %v592_v2, 4 }
  0x63   : > { %5789 = vst [vmem:[#allocation22_spill] sm:$0xff] %v4990_v17  ;;  %5790 = vst [vmem:[#allocation23_spill] sm:$0xff] %v4992_v20  ;;  %3694 = vmatprep.mubr.msk.bf16.mxu1 %vm707_vm3, %v4990_v17  ;;  %3848 = vmatprep.mubr.msk.bf16.mxu0 %vm707_vm3, %v4992_v20  ;;  %v603_v40 = vrot.slane %v602_v19, 4  ;;  %v613_v43 = vshll.u32 %v4979_v25, 16  ;;  %v619_v5 = vshll.u32 %v4988_v32, 16  ;;  %v623_v12 = vshrl.u32 %v4988_v32, 16 }
  0x64   : > { %v1277_v8 = vsel %vm4798_vm7, %v3355_v4, %v1276_v0  ;;  %v1278_v50 = vrot.slane %v1276_v0, 4  ;;  %v612_v55 = vrot.slane %v610_v22, 4  ;;  %v598_v59 = vsel %vm4617_vm4, %v593_v53, %v597_v41  ;;  %v5014_v17 = vld [vmem:[%s4570_s11 + $0xb4] sm:$0xf]  ;;  %v5026_v53 = vld [vmem:[%s4570_s11 + $0xb8] sm:$0xf] }
  0x65   : > { %v608_v35 = vsel %vm4617_vm4, %v603_v40, %v607_v37  ;;  %v615_v2 = vrot.slane %v613_v43, 5  ;;  %v621_v19 = vrot.slane %v619_v5, 5  ;;  %v625_v0 = vrot.slane %v623_v12, 4 }
  0x66   : > { %v5016_v20 = vcombine.low %v598_v59, %v608_v35  ;;  %v1280_v4 = vsel %vm4798_vm7, %v1278_v50, %v1279_v44  ;;  %v629_v22 = vshll.u32 %v5002_v18, 16  ;;  %v3356_v41 = vrot.slane %v4740_v42, 9  ;;  %v5032_v44 = vld [vmem:[%s4570_s11 + $0xbc] sm:$0x1] }
  0x67   : > { %v5021_v30 = vcombine.low %v1277_v8, %v1280_v4  ;;  %v616_v63 = vor.u32 %v615_v2, %v612_v55  ;;  %v1283_v37 = vrot.slane %v4745_v6, 5  ;;  %v626_v40 = vor.u32 %v625_v0, %v621_v19 }
  0x68   : > { %5791 = vst [vmem:[#allocation24_spill] sm:$0xff] %v5016_v20  ;;  %3695 = vmatmul.mubr.msk.bf16.gmra.mrb[24].mxu1 %vm707_vm3, %v5016_v20  ;;  %v631_v43 = vrot.slane %v629_v22, 5  ;;  %v1286_v5 = vrot.slane %v4758_v11, 5  ;;  %v634_v50 = vshrl.u32 %v5014_v17, 16  ;;  %v637_v59 = vshll.u32 %v5014_v17, 16 }
  0x69   : > { %5792 = vst [vmem:[#allocation25_spill] sm:$0xff] %v5021_v30  ;;  %3849 = vmatmul.mubr.msk.bf16.gmra.mrb[8].mxu0 %vm707_vm3, %v5021_v30  ;;  %v617_v8 = vrot.slane %v616_v63, 4  ;;  %v1284_v55 = vsel %vm4798_vm7, %v3356_v41, %v1283_v37  ;;  %v1285_v12 = vrot.slane %v1283_v37, 4  ;;  %v627_v35 = vrot.slane %v626_v40, 4 }
  0x6a   : > { %v636_v2 = vrot.slane %v634_v50, 4  ;;  %v643_v4 = vshll.u32 %v5026_v53, 16  ;;  %v647_v11 = vshrl.u32 %v5026_v53, 16  ;;  %v639_v20 = vrot.slane %v637_v59, 5 }
  0x6b   : > { %v622_v0 = vsel %vm4617_vm4, %v617_v8, %v621_v19  ;;  %v1287_v22 = vsel %vm4798_vm7, %v1285_v12, %v1286_v5  ;;  %v653_v63 = vshll.u32 %v5032_v44, 16  ;;  %v632_v41 = vsel %vm4617_vm4, %v627_v35, %v631_v43 }
  0x6c   : > { %v5049_v37 = vcombine.low %v1284_v55, %v1287_v22  ;;  %v645_v40 = vrot.slane %v643_v4, 5  ;;  %v649_v50 = vrot.slane %v647_v11, 4  ;;  %v5051_v30 = vcombine.low %v622_v0, %v632_v41 }
  0x6d   : > { %v640_v21 = vor.u32 %v639_v20, %v636_v2  ;;  %v655_v45 = vrot.slane %v653_v63, 5  ;;  %v3357_v42 = vrot.slane %v4762_v15, 9  ;;  %v1290_v5 = vrot.slane %v4767_v27, 5 }
  0x6e   : > { %3852 = vmatprep.mubr.msk.bf16.mxu0 %vm707_vm3, %v5049_v37  ;;  %v650_v19 = vor.u32 %v649_v50, %v645_v40  ;;  %v1293_v8 = vrot.slane %v4781_v47, 5  ;;  %v3358_v43 = vrot.slane %v4789_v54, 9  ;;  %3698 = vmatprep.mubr.msk.bf16.mxu1 %vm707_vm3, %v5051_v30  ;;  %v3317_v20 = vcombine.low %v4584_v9, %v4587_v10 }
  0x6f   : > { %v641_v55 = vrot.slane %v640_v21, 4  ;;  %v1297_v12 = vrot.slane %v4805_v36, 5  ;;  %v1300_v59 = vrot.slane %v4818_v51, 5  ;;  %v1291_v2 = vsel %vm4798_vm7, %v3357_v42, %v1290_v5 }
  0x70   : > { %v651_v35 = vrot.slane %v650_v19, 4  ;;  %v1292_v4 = vrot.slane %v1290_v5, 4  ;;  %v1304_v47 = vrot.slane %v4846_v31, 5  ;;  %v3359_v9 = vrot.slane %v4830_v56, 9 }
  0x71   : > { %v646_v11 = vsel %vm4617_vm4, %v641_v55, %v645_v40  ;;  %v1298_v21 = vsel %vm4798_vm7, %v3358_v43, %v1297_v12  ;;  %v1299_v0 = vrot.slane %v1297_v12, 4  ;;  %v1307_v42 = vrot.slane %v4851_v49, 5 }
  0x72   : > { %v656_v10 = vsel %vm4617_vm4, %v651_v35, %v655_v45  ;;  %v1294_v51 = vsel %vm4798_vm7, %v1292_v4, %v1293_v8  ;;  %v1306_v22 = vrot.slane %v1304_v47, 4  ;;  %v3360_v19 = vrot.slane %v4877_v29, 9 }
  0x73   : > { %v5078_v63 = vcombine.low %v646_v11, %v656_v10  ;;  %v5080_v41 = vcombine.low %v1291_v2, %v1294_v51  ;;  %v1301_v40 = vsel %vm4798_vm7, %v1299_v0, %v1300_v59  ;;  %v1311_v5 = vrot.slane %v4883_v16, 5 }
  0x74   : > { %v5084_v50 = vcombine.low %v1298_v21, %v1301_v40  ;;  %v1314_v49 = vrot.slane %v4893_v1, 5  ;;  %v1305_v45 = vsel %vm4798_vm7, %v3359_v9, %v1304_v47  ;;  %v1308_v8 = vsel %vm4798_vm7, %v1306_v22, %v1307_v42 }
  0x75   : > { %3699 = vmatmul.mubr.msk.bf16.gmra.mrb[28].mxu1 %vm707_vm3, %v5078_v63  ;;  %3853 = vmatmul.mubr.msk.bf16.gmra.mrb[12].mxu0 %vm707_vm3, %v5080_v41  ;;  %v1313_v43 = vrot.slane %v1311_v5, 4  ;;  %v1318_v55 = vrot.slane %v4926_v46, 5  ;;  %v1325_v12 = vrot.slane %v4956_v7, 5  ;;  %v1312_v59 = vsel %vm4798_vm7, %v3360_v19, %v1311_v5 }
  0x76   : > { %3704 = vmatprep.mubr.msk.bf16.mxu1 %vm707_vm3, %v3317_v20  ;;  %3856 = vmatprep.mubr.msk.bf16.mxu0 %vm707_vm3, %v5084_v50  ;;  %v5106_v20 = vcombine.low %v1305_v45, %v1308_v8  ;;  %v3361_v35 = vrot.slane %v4907_v61, 9  ;;  %v1321_v4 = vrot.slane %v4931_v3, 5  ;;  %v5112_v47 = vcombine.low %v4613_v33, %v4626_v39  ;;  %v5124_v3 = vld [vmem:[%s5732_s1 + $0x6] sm:$0x3] }
  0x77   : > { %v1315_v1 = vsel %vm4798_vm7, %v1313_v43, %v1314_v49  ;;  %v1320_v2 = vrot.slane %v1318_v55, 4  ;;  %v3362_v11 = vrot.slane %v4949_v60, 9  ;;  %v1443_v21 = vsel %vm756_vm0, %v4666_v23, 0 }
  0x78   : > { %v5117_v0 = vcombine.low %v1312_v59, %v1315_v1  ;;  %v1327_v9 = vrot.slane %v1325_v12, 4  ;;  %v1328_v10 = vrot.slane %v4969_v58, 5  ;;  %v1332_v51 = vrot.slane %v4988_v32, 5 }
  0x79   : > { %v1319_v33 = vsel %vm4798_vm7, %v3361_v35, %v1318_v55  ;;  %v1322_v39 = vsel %vm4798_vm7, %v1320_v2, %v1321_v4  ;;  %v5138_v23 = vcombine.low %v4640_v57, %v4645_v62  ;;  %v1326_v58 = vsel %vm4798_vm7, %v3362_v11, %v1325_v12 }
  0x7a   : > { %v5144_v22 = vcombine.low %v4762_v15, %v4767_v27  ;;  %v1329_v42 = vsel %vm4798_vm7, %v1327_v9, %v1328_v10  ;;  %v3363_v40 = vrot.slane %v4979_v25, 9  ;;  %v1339_v19 = vrot.slane %v5026_v53, 5 }
  0x7b   : > { %v5154_v57 = vcombine.low %v4789_v54, %v4805_v36  ;;  %v5158_v62 = vcombine.low %v1319_v33, %v1322_v39  ;;  %v1334_v15 = vrot.slane %v1332_v51, 4  ;;  %v1335_v27 = vrot.slane %v5002_v18, 5  ;;  %v265_v18 = vld [vmem:[%s4570_s11 + $0xc8] sm:$0x1] }
  0x7c   : > { %v5163_v5 = vcombine.low %v4830_v56, %v4846_v31  ;;  %v5167_v49 = vcombine.low %v4877_v29, %v4883_v16  ;;  %v5171_v54 = vcombine.low %v4907_v61, %v4926_v46  ;;  %v5175_v36 = vcombine.low %v4949_v60, %v4956_v7  ;;  %v5194_v61 = vld [vmem:[%s4570_s11 + $0xc4] sm:$0xf] }
  0x7d   : > { %3705 = vmatmul.mubr.msk.bf16.vlgmr.msra.gmra.mrb[0].mxu1 %vm707_vm3, %v4623_v38  ;;  %3857 = vmatmul.mubr.msk.bf16.gmra.mrb[16].mxu0 %vm707_vm3, %v5106_v20  ;;  %v5179_v45 = vcombine.low %v4979_v25, %v4988_v32  ;;  %v5183_v56 = vcombine.low %v4659_v14, %v4671_v28  ;;  %v5185_v31 = vcombine.low %v1326_v58, %v1329_v42  ;;  %v3364_v16 = vrot.slane %v5014_v17, 9  ;;  %v5793_v42 = vld [vmem:[#allocation8_spill] sm:$0xff] }
  0x7e   : > { %3737 = vmatpush3.bf16.msra.mxu1 %v1443_v21  ;;  %3708 = vmatprep.mubr.msk.bf16.mxu1 %vm707_vm3, %v5112_v47  ;;  %v5189_v29 = vcombine.low %v5014_v17, %v5026_v53  ;;  %v1341_v7 = vrot.slane %v1339_v19, 4  ;;  %v1342_v60 = vrot.slane %v5032_v44, 5  ;;  %v1333_v14 = vsel %vm4798_vm7, %v3363_v40, %v1332_v51  ;;  %v5214_v17 = vld [vmem:[%s4570_s11 + $0xc0] sm:$0xf] }
  0x7f   : > { %3860 = vmatprep.mubr.msk.bf16.mxu0 %vm707_vm3, %v5117_v0  ;;  %4235 = vmatprep.subr.msk.bf16.mxu1 %vm756_vm0, %v5124_v3  ;;  %v1336_v28 = vsel %vm4798_vm7, %v1334_v15, %v1335_v27  ;;  %v2075_v25 = vrot.slane %v5194_v61, 5  ;;  %v1340_v46 = vsel %vm4798_vm7, %v3364_v16, %v1339_v19  ;;  %v5219_v53 = vcombine.low %v4686_v48, %v4694_v52 }
  0x80   : > { %v1343_v32 = vsel %vm4798_vm7, %v1341_v7, %v1342_v60  ;;  %v5221_v44 = vcombine.low %v1333_v14, %v1336_v28  ;;  %v5225_v8 = vcombine.low %v4711_v13, %v4718_v24  ;;  %v1845_v43 = vshrl.u32 %v5214_v17, 16  ;;  %v3490_v60 = vld [vmem:[%s5732_s1 + $0x10] sm:$0x3]  ;;  %v4382_v14 = vld [vmem:[%s4570_s11 + $0x4] sm:$0xf] }
  0x81   : > { %v1848_v55 = vshll.u32 %v5214_v17, 16  ;;  %v1854_v12 = vshll.u32 %v5194_v61, 16  ;;  %v1858_v59 = vshrl.u32 %v5194_v61, 16  ;;  %v5231_v1 = vcombine.low %v1340_v46, %v1343_v32  ;;  %v4384_v32 = vld [vmem:[%s4570_s11] sm:$0xf] }
  0x82   : > { %v3434_v35 = vrot.slane %v5214_v17, 9  ;;  %v2077_v48 = vrot.slane %v2075_v25, 4  ;;  %v2078_v52 = vrot.slane %v265_v18, 5  ;;  %v1847_v2 = vrot.slane %v1845_v43, 4 }
  0x83   : > { %v1850_v4 = vrot.slane %v1848_v55, 5  ;;  %v1856_v11 = vrot.slane %v1854_v12, 5  ;;  %v1860_v21 = vrot.slane %v1858_v59, 4  ;;  %v1864_v9 = vshll.u32 %v265_v18, 16 }
  0x84   : > { %v2076_v10 = vsel %vm4798_vm7, %v3434_v35, %v2075_v25  ;;  %v2079_v51 = vsel %vm4798_vm7, %v2077_v48, %v2078_v52  ;;  %v5248_v40 = vcombine.low %v5793_v42, %v4745_v6  ;;  %v5794_v6 = vld [vmem:[#allocation18_spill] sm:$0xff]  ;;  %v1234_v28 = vrot.slane %v4382_v14, 5  ;;  %v5795_v48 = vld [vmem:[#allocation13_spill] sm:$0xff]  ;;  %v5796_v52 = vld [vmem:[#allocation15_spill] sm:$0xff] }
  0x85   : > { %3709 = vmatmul.mubr.msk.bf16.gmra.mrb[4].mxu1 %vm707_vm3, %v5138_v23  ;;  %3861 = vmatmul.mubr.msk.bf16.gmra.mrb[20].mxu0 %vm707_vm3, %v5158_v62  ;;  %v1851_v13 = vor.u32 %v1850_v4, %v1847_v2  ;;  %v1861_v24 = vor.u32 %v1860_v21, %v1856_v11  ;;  %v1866_v58 = vrot.slane %v1864_v9, 5  ;;  %v5250_v19 = vcombine.low %v2076_v10, %v2079_v51  ;;  %v4383_v25 = vld [vmem:[%s4570_s11 + $0x8] sm:$0x1]  ;;  %v5798_v4 = vld [vmem:[#allocation20_spill] sm:$0xff]  ;;  %v5799_v21 = vld [vmem:[#allocation23_spill] sm:$0xff] }
  0x86   : > { %3712 = vmatprep.mubr.msk.bf16.mxu1 %vm707_vm3, %v5183_v56  ;;  %3864 = vmatprep.mubr.msk.bf16.mxu0 %vm707_vm3, %v5185_v31  ;;  %v2523_v7 = vsel %vm756_vm0, %v5794_v6, 0  ;;  %v1237_v46 = vrot.slane %v4383_v25, 5  ;;  %v3349_v18 = vrot.slane %v4384_v32, 9  ;;  %v1236_v43 = vrot.slane %v1234_v28, 4  ;;  %v4385_v2 = vld [vmem:[%s5732_s1 + $0x8] sm:$0x3] }
  0x87   : > { %v1852_v33 = vrot.slane %v1851_v13, 4  ;;  %v1862_v39 = vrot.slane %v1861_v24, 4  ;;  %v1649_v35 = vsel %vm756_vm0, %v5124_v3, 0  ;;  %v5797_v3 = vld [vmem:[#allocation17_spill] sm:$0xff]  ;;  %v5345_v24 = vld [vmem:[%s4570_s11 + $0xcc] sm:$0xf] }
  0x88   : > { %v1235_v55 = vsel %vm4798_vm7, %v3349_v18, %v1234_v28  ;;  %v1238_v12 = vsel %vm4798_vm7, %v1236_v43, %v1237_v46  ;;  %v5800_v13 = vld [vmem:[#allocation25_spill] sm:$0xff]  ;;  %v5348_v9 = vld [vmem:[%s4570_s11 + $0xd0] sm:$0xf]  ;;  %v2735_v10 = vsel %vm756_vm0, %v3490_v60, 0  ;;  %v5806_v42 = vld [vmem:[#allocation12_spill] sm:$0xff]  ;;  %v2494_v14 = vshll.u32 %v5345_v24, 16 }
  0x89   : > { %v1857_v15 = vsel %vm4617_vm4, %v1852_v33, %v1856_v11  ;;  %v1867_v27 = vsel %vm4617_vm4, %v1862_v39, %v1866_v58  ;;  %v3366_v59 = vcombine.low %v1235_v55, %v1238_v12  ;;  %v5334_v11 = vcombine.low %v5214_v17, %v5194_v61  ;;  %v5801_v17 = vld [vmem:[#allocation6_spill] sm:$0xff]  ;;  %v5802_v51 = vld [vmem:[#allocation7_spill] sm:$0xff]  ;;  %v5803_v33 = vld [vmem:[#allocation9_spill] sm:$0xff] }
  0x8a   : > { %v5256_v16 = vcombine.low %v1857_v15, %v1867_v27  ;;  %v3454_v61 = vcombine.low %v5345_v24, %v5348_v9  ;;  %v5804_v39 = vld [vmem:[#allocation10_spill] sm:$0xff]  ;;  %v5805_v58 = vld [vmem:[#allocation11_spill] sm:$0xff]  ;;  %v5808_v27 = vld [vmem:[#allocation16_spill] sm:$0xff]  ;;  %v2504_v28 = vshrl.u32 %v5348_v9, 16  ;;  %v2496_v32 = vrot.slane %v2494_v14, 5 }
  0x8b   : > { %v5807_v15 = vld [vmem:[#allocation14_spill] sm:$0xff]  ;;  %v5809_v6 = vld [vmem:[#allocation19_spill] sm:$0xff]  ;;  %v5811_v25 = vld [vmem:[#allocation5_spill] sm:$0xff]  ;;  %v2721_v34 = vrot.slane %v5348_v9, 5 }
  0x8c   : > { %v5812_v46 = vld [vmem:[#allocation22_spill] sm:$0xff]  ;;  %v2506_v43 = vrot.slane %v2504_v28, 4  ;;  %v268_v55 = vld [vmem:[%s4570_s11 + $0xd4] sm:$0x1]  ;;  %v5813_v12 = vld [vmem:[#allocation24_spill] sm:$0xff]  ;;  %s5538_s11 = scalar_lea.vmem [#allocation2], %s3282_s10 }
  0x8d   : > { %3713 = vmatmul.mubr.msk.bf16.gmra.mrb[8].mxu1 %vm707_vm3, %v5219_v53  ;;  %3865 = vmatmul.mubr.msk.bf16.gmra.mrb[24].mxu0 %vm707_vm3, %v5221_v44  ;;  %s3176_s19 = sshll.u32 %s5538_s11, 4  ;;  %s5679_s19 = int_to_ptr.vmem [resolvable:$true] %s3176_s19 }
  0x8e   : > { %3716 = vmatprep.mubr.msk.bf16.mxu1 %vm707_vm3, %v5225_v8  ;;  %3868 = vmatprep.mubr.msk.bf16.mxu0 %vm707_vm3, %v5231_v1  ;;  %s4386_s27 = scalar_lea.vmem %s5679_s19, 4096  ;;  %p4393_p1 = scmp.lt.s32.totalorder %s5679_s19, %s4391_s29 }
  0x8f   : > { %p4387_p12 = scmp.ne.s32.totalorder %s5679_s19, %s4386_s27  ;;  %p4394_p2 = scmp.lt.s32.totalorder %s4392_s30, %s4386_s27 }
  0x91   : > { %p4388_p13 = pnand %p4387_p12, %p4529_p4  ;;  %p4395_p3 = por %p4394_p2, %p4393_p1 }
  0x93   : > { %p4389_p0 = pneg %p4388_p13 }
  0x95   : > { %3717 = vmatmul.mubr.msk.bf16.gmra.mrb[12].mxu1 %vm707_vm3, %v5248_v40  ;;  %3869 = vmatmul.mubr.msk.bf16.gmra.mrb[28].mxu0 %vm707_vm3, %v5250_v19  ;;  %p4396_p5 = pnand %p4395_p3, %p4389_p0 }
  0x96   : > { %3720 = vmatprep.mubr.msk.bf16.mxu1 %vm707_vm3, %v5144_v22  ;;  %3874 = vmatprep.mubr.msk.bf16.mxu0 %vm707_vm3, %v5112_v47 }
  0x9d   : > { %3721 = vmatmul.mubr.msk.bf16.gmra.mrb[16].mxu1 %vm707_vm3, %v5154_v57  ;;  %3875 = vmatmul.mubr.msk.bf16.vlgmr.msra.gmra.mrb[0].mxu0 %vm707_vm3, %v5138_v23 }
  0x9e   : > { %3907 = vmatpush3.bf16.msra.mxu0 %v2523_v7  ;;  %3724 = vmatprep.mubr.msk.bf16.mxu1 %vm707_vm3, %v5163_v5  ;;  %v5810_v7 = vld [vmem:[#allocation21_spill] sm:$0xff] }
  0x9f   : > { %3878 = vmatprep.mubr.msk.bf16.mxu0 %vm707_vm3, %v5183_v56  ;;  %4241 = vmatprep.subr.msk.bf16.mxu0 %vm756_vm0, %v3490_v60  ;;  %v2491_v60 = vshrl.u32 %v5345_v24, 16 }
  0xa5   : > { %3725 = vmatmul.mubr.msk.bf16.gmra.mrb[20].mxu1 %vm707_vm3, %v5167_v49  ;;  %3879 = vmatmul.mubr.msk.bf16.gmra.mrb[4].mxu0 %vm707_vm3, %v5219_v53 }
  0xa6   : > { %3728 = vmatprep.mubr.msk.bf16.mxu1 %vm707_vm3, %v5171_v54  ;;  %3882 = vmatprep.mubr.msk.bf16.mxu0 %vm707_vm3, %v5225_v8 }
  0xad   : > { %3729 = vmatmul.mubr.msk.bf16.gmra.mrb[24].mxu1 %vm707_vm3, %v5175_v36  ;;  %3883 = vmatmul.mubr.msk.bf16.gmra.mrb[8].mxu0 %vm707_vm3, %v5248_v40 }
  0xae   : > { %3732 = vmatprep.mubr.msk.bf16.mxu1 %vm707_vm3, %v5179_v45  ;;  %3886 = vmatprep.mubr.msk.bf16.mxu0 %vm707_vm3, %v5144_v22 }
  0xb5   : > { %3733 = vmatmul.mubr.msk.bf16.gmra.mrb[28].mxu1 %vm707_vm3, %v5189_v29  ;;  %3887 = vmatmul.mubr.msk.bf16.gmra.mrb[12].mxu0 %vm707_vm3, %v5154_v57 }
  0xb6   : > { %3738 = vmatprep.mubr.msk.bf16.mxu1 %vm707_vm3, %v3366_v59  ;;  %3890 = vmatprep.mubr.msk.bf16.mxu0 %vm707_vm3, %v5163_v5 }
  0xbd   : > { %3739 = vmatmul.mubr.msk.bf16.vlgmr.msra.gmra.mrb[0].mxu1 %vm707_vm3, %v5795_v48  ;;  %3891 = vmatmul.mubr.msk.bf16.gmra.mrb[16].mxu0 %vm707_vm3, %v5167_v49 }
  0xbe   : > { %3771 = vmatpush3.bf16.msra.mxu1 %v1649_v35  ;;  %3742 = vmatprep.mubr.msk.bf16.mxu1 %vm707_vm3, %v5796_v52  ;;  %v2510_v35 = vshll.u32 %v268_v55, 16 }
  0xbf   : > { %3894 = vmatprep.mubr.msk.bf16.mxu0 %vm707_vm3, %v5171_v54  ;;  %4237 = vmatprep.subr.msk.bf16.mxu1 %vm756_vm0, %v4385_v2 }
  0xc5   : > { %3743 = vmatmul.mubr.msk.bf16.gmra.mrb[4].mxu1 %vm707_vm3, %v5797_v3  ;;  %3895 = vmatmul.mubr.msk.bf16.gmra.mrb[20].mxu0 %vm707_vm3, %v5175_v36 }
  0xc6   : > { %3746 = vmatprep.mubr.msk.bf16.mxu1 %vm707_vm3, %v5798_v4  ;;  %3898 = vmatprep.mubr.msk.bf16.mxu0 %vm707_vm3, %v5179_v45 }
  0xcd   : > { %3747 = vmatmul.mubr.msk.bf16.gmra.mrb[8].mxu1 %vm707_vm3, %v5799_v21  ;;  %3899 = vmatmul.mubr.msk.bf16.gmra.mrb[24].mxu0 %vm707_vm3, %v5189_v29 }
  0xce   : > { %3750 = vmatprep.mubr.msk.bf16.mxu1 %vm707_vm3, %v5800_v13  ;;  %3902 = vmatprep.mubr.msk.bf16.mxu0 %vm707_vm3, %v5334_v11 }
  0xd5   : > { %3751 = vmatmul.mubr.msk.bf16.gmra.mrb[12].mxu1 %vm707_vm3, %v5049_v37  ;;  %3903 = vmatmul.mubr.msk.bf16.gmra.mrb[28].mxu0 %vm707_vm3, %v3454_v61  ;;  %v2512_v61 = vrot.slane %v2510_v35, 5 }
  0xd6   : > { %3754 = vmatprep.mubr.msk.bf16.mxu1 %vm707_vm3, %v5080_v41  ;;  %3908 = vmatprep.mubr.msk.bf16.mxu0 %vm707_vm3, %v5801_v17 }
  0xdd   : > { %3755 = vmatmul.mubr.msk.bf16.gmra.mrb[16].mxu1 %vm707_vm3, %v5084_v50  ;;  %3909 = vmatmul.mubr.msk.bf16.vlgmr.msra.gmra.mrb[0].mxu0 %vm707_vm3, %v5802_v51 }
  0xde   : > { %3941 = vmatpush3.bf16.msra.mxu0 %v2735_v10  ;;  %3758 = vmatprep.mubr.msk.bf16.mxu1 %vm707_vm3, %v5106_v20 }
  0xdf   : > { %3912 = vmatprep.mubr.msk.bf16.mxu0 %vm707_vm3, %v5803_v33 }
  0xe5   : > { %3759 = vmatmul.mubr.msk.bf16.gmra.mrb[20].mxu1 %vm707_vm3, %v5117_v0  ;;  %3913 = vmatmul.mubr.msk.bf16.gmra.mrb[4].mxu0 %vm707_vm3, %v5804_v39 }
  0xe6   : > { %3762 = vmatprep.mubr.msk.bf16.mxu1 %vm707_vm3, %v5158_v62  ;;  %3916 = vmatprep.mubr.msk.bf16.mxu0 %vm707_vm3, %v5805_v58 }
  0xed   : > { %3763 = vmatmul.mubr.msk.bf16.gmra.mrb[24].mxu1 %vm707_vm3, %v5185_v31  ;;  %3917 = vmatmul.mubr.msk.bf16.gmra.mrb[8].mxu0 %vm707_vm3, %v5806_v42 }
  0xee   : > { %3766 = vmatprep.mubr.msk.bf16.mxu1 %vm707_vm3, %v5221_v44  ;;  %3920 = vmatprep.mubr.msk.bf16.mxu0 %vm707_vm3, %v5807_v15 }
  0xf5   : > { %3767 = vmatmul.mubr.msk.bf16.gmra.mrb[28].mxu1 %vm707_vm3, %v5231_v1  ;;  %3921 = vmatmul.mubr.msk.bf16.gmra.mrb[12].mxu0 %vm707_vm3, %v5808_v27 }
  0xf6   : > { %3772 = vmatprep.mubr.msk.bf16.mxu1 %vm707_vm3, %v4623_v38  ;;  %3924 = vmatprep.mubr.msk.bf16.mxu0 %vm707_vm3, %v5809_v6  ;;  %v2500_v38 = vshll.u32 %v5348_v9, 16 }
  0xf8   : > { %v2502_v18 = vrot.slane %v2500_v38, 5 }
  0xfa   : > { %v2507_v59 = vor.u32 %v2506_v43, %v2502_v18 }
  0xfc   : > { %v2508_v2 = vrot.slane %v2507_v59, 4 }
  0xfd   : > { %3773 = vmatmul.mubr.msk.bf16.vlgmr.msra.gmra.mrb[0].mxu1 %vm707_vm3, %v5112_v47  ;;  %3925 = vmatmul.mubr.msk.bf16.gmra.mrb[16].mxu0 %vm707_vm3, %v5810_v7  ;;  %v2493_v47 = vrot.slane %v2491_v60, 4 }
  0xfe   : > { %3975 = vmatpush3.bf16.msra.mxu1 %v5811_v25  ;;  %3776 = vmatprep.mubr.msk.bf16.mxu1 %vm707_vm3, %v5138_v23 }
  0xff   : > { %3928 = vmatprep.mubr.msk.bf16.mxu0 %vm707_vm3, %v5812_v46  ;;  %v2497_v23 = vor.u32 %v2496_v32, %v2493_v47 }
 0x101   : > { %v2498_v48 = vrot.slane %v2497_v23, 4 }
 0x105   : > { %3777 = vmatmul.mubr.msk.bf16.gmra.mrb[4].mxu1 %vm707_vm3, %v5183_v56  ;;  %3929 = vmatmul.mubr.msk.bf16.gmra.mrb[20].mxu0 %vm707_vm3, %v5813_v12  ;;  %v2503_v56 = vsel %vm4617_vm4, %v2498_v48, %v2502_v18 }
 0x106   : > { %3780 = vmatprep.mubr.msk.bf16.mxu1 %vm707_vm3, %v5219_v53  ;;  %3932 = vmatprep.mubr.msk.bf16.mxu0 %vm707_vm3, %v5051_v30  ;;  %v2513_v53 = vsel %vm4617_vm4, %v2508_v2, %v2512_v61 }
 0x107   : > { %v3472_v17 = vcombine.low %v2503_v56, %v2513_v53 }
 0x10d   : > { %3781 = vmatmul.mubr.msk.bf16.gmra.mrb[8].mxu1 %vm707_vm3, %v5225_v8  ;;  %3933 = vmatmul.mubr.msk.bf16.gmra.mrb[24].mxu0 %vm707_vm3, %v5078_v63 }
 0x10e   : > { %3784 = vmatprep.mubr.msk.bf16.mxu1 %vm707_vm3, %v5248_v40  ;;  %3936 = vmatprep.mubr.msk.bf16.mxu0 %vm707_vm3, %v5256_v16 }
 0x115   : > { %3785 = vmatmul.mubr.msk.bf16.gmra.mrb[12].mxu1 %vm707_vm3, %v5144_v22  ;;  %3937 = vmatmul.mubr.msk.bf16.gmra.mrb[28].mxu0 %vm707_vm3, %v3472_v17 }
 0x116   : > { %3788 = vmatprep.mubr.msk.bf16.mxu1 %vm707_vm3, %v5154_v57  ;;  %3942 = vmatprep.mubr.msk.bf16.mxu0 %vm707_vm3, %v5796_v52 }
 0x11d   : > { %3789 = vmatmul.mubr.msk.bf16.gmra.mrb[16].mxu1 %vm707_vm3, %v5163_v5  ;;  %3943 = vmatmul.mubr.msk.bf16.vlgmr.msra.gmra.mrb[0].mxu0 %vm707_vm3, %v5797_v3 }
 0x11e   : > { %3792 = vmatprep.mubr.msk.bf16.mxu1 %vm707_vm3, %v5167_v49  ;;  %3946 = vmatprep.mubr.msk.bf16.mxu0 %vm707_vm3, %v5798_v4 }
 0x125   : > { %3793 = vmatmul.mubr.msk.bf16.gmra.mrb[20].mxu1 %vm707_vm3, %v5171_v54  ;;  %3947 = vmatmul.mubr.msk.bf16.gmra.mrb[4].mxu0 %vm707_vm3, %v5799_v21 }
 0x126   : > { %3796 = vmatprep.mubr.msk.bf16.mxu1 %vm707_vm3, %v5175_v36  ;;  %3950 = vmatprep.mubr.msk.bf16.mxu0 %vm707_vm3, %v5800_v13 }
 0x12d   : > { %3797 = vmatmul.mubr.msk.bf16.gmra.mrb[24].mxu1 %vm707_vm3, %v5179_v45  ;;  %3951 = vmatmul.mubr.msk.bf16.gmra.mrb[8].mxu0 %vm707_vm3, %v5049_v37  ;;  %v3489_v37 = vrot.slane %v5345_v24, 9 }
 0x12e   : > { %3800 = vmatprep.mubr.msk.bf16.mxu1 %vm707_vm3, %v5189_v29  ;;  %3954 = vmatprep.mubr.msk.bf16.mxu0 %vm707_vm3, %v5080_v41  ;;  %v2723_v41 = vrot.slane %v2721_v34, 4 }
 0x135   : > { %3801 = vmatmul.mubr.msk.bf16.gmra.mrb[28].mxu1 %vm707_vm3, %v5334_v11  ;;  %3955 = vmatmul.mubr.msk.bf16.gmra.mrb[12].mxu0 %vm707_vm3, %v5084_v50  ;;  %v2724_v50 = vrot.slane %v268_v55, 5 }
 0x136   : > { %3822 = vmatprep.mubr.msk.bf16.mxu1 %vm707_vm3, %v5808_v27  ;;  %3958 = vmatprep.mubr.msk.bf16.mxu0 %vm707_vm3, %v5106_v20  ;;  %v2722_v20 = vsel %vm4798_vm7, %v3489_v37, %v2721_v34 }
 0x13d   : > { %3823 = vmatmul.mubr.msk.bf16.vlgmr.msra.gmra.mrb[16].mxu1 %vm707_vm3, %v5809_v6  ;;  %3959 = vmatmul.mubr.msk.bf16.gmra.mrb[16].mxu0 %vm707_vm3, %v5117_v0  ;;  %v2725_v0 = vsel %vm4798_vm7, %v2723_v41, %v2724_v50 }
 0x13e   : > { %3826 = vmatprep.mubr.msk.bf16.mxu1 %vm707_vm3, %v5810_v7  ;;  %3962 = vmatprep.mubr.msk.bf16.mxu0 %vm707_vm3, %v5158_v62  ;;  %v3491_v22 = vcombine.low %v2722_v20, %v2725_v0 }
 0x145   : > { %3827 = vmatmul.mubr.msk.bf16.gmra.mrb[20].mxu1 %vm707_vm3, %v5812_v46  ;;  %3963 = vmatmul.mubr.msk.bf16.gmra.mrb[20].mxu0 %vm707_vm3, %v5185_v31 }
 0x146   : > { %3830 = vmatprep.mubr.msk.bf16.mxu1 %vm707_vm3, %v5813_v12  ;;  %3966 = vmatprep.mubr.msk.bf16.mxu0 %vm707_vm3, %v5221_v44 }
 0x14d   : > { %3831 = vmatmul.mubr.msk.bf16.gmra.mrb[24].mxu1 %vm707_vm3, %v5051_v30  ;;  %3967 = vmatmul.mubr.msk.bf16.gmra.mrb[24].mxu0 %vm707_vm3, %v5231_v1 }
 0x14e   : > { %3834 = vmatprep.mubr.msk.bf16.mxu1 %vm707_vm3, %v5078_v63  ;;  %3970 = vmatprep.mubr.msk.bf16.mxu0 %vm707_vm3, %v5250_v19 }
 0x155   : > { %3835 = vmatmul.mubr.msk.bf16.gmra.mrb[28].mxu1 %vm707_vm3, %v5256_v16  ;;  %3971 = vmatmul.mubr.msk.bf16.gmra.mrb[28].mxu0 %vm707_vm3, %v3491_v22  ;;  %v5513_v16 = vld [vmem:[%s5733_s2] ss:$0 sm:$0xff] }
 0x1d0   : > { %v3774_v30 = vpop.f32.mrb[0].mxu1 }
 0x1d1   : > { %v1685_v57 = vpop.f32.mrb[1].mxu1 }
 0x1d2   : > { %v3775_v62 = vpop.f32.mrb[2].mxu1 }
 0x1d3   : > { %v1688_v5 = vpop.f32.mrb[3].mxu1 }
 0x1d8   : > { %v3778_v63 = vpop.f32.mrb[4].mxu1 }
 0x1d9   : > { %v1701_v49 = vpop.f32.mrb[5].mxu1 }
 0x1da   : > { %v3779_v54 = vpop.f32.mrb[6].mxu1 }
 0x1db   : > { %v1704_v36 = vpop.f32.mrb[7].mxu1 }
 0x1e0   : > { %v3782_v45 = vpop.f32.mrb[8].mxu1 }
 0x1e1   : > { %v1717_v31 = vpop.f32.mrb[9].mxu1 }
 0x1e2   : > { %v5498_v29 = vpop.f32.mrb[10].mxu1 }
 0x1e3   : > { %v5500_v26 = vpop.f32.mrb[11].mxu1 }
 0x1e8   : > { %v5502_v44 = vpop.f32.mrb[12].mxu1 }
 0x1e9   : > { %v5504_v8 = vpop.f32.mrb[13].mxu1 }
 0x1ea   : > { %v5506_v1 = vpop.f32.mrb[14].mxu1 }
 0x1eb   : > { %v5508_v40 = vpop.f32.mrb[15].mxu1 }
 0x1f0   : > { %v3944_v19 = vpop.f32.mrb[0].mxu0 }
 0x1f1   : > { %v3976_v52 = vadd.f32 %v3944_v19, %v3774_v30  ;;  %v2771_v3 = vpop.f32.mrb[1].mxu0 }
 0x1f2   : > { %v3977_v4 = vadd.f32 %v2771_v3, %v1685_v57  ;;  %v3945_v11 = vpop.f32.mrb[2].mxu0 }
 0x1f3   : > { %v2939_v21 = vadd.f32 %v3976_v52, %v5513_v16  ;;  %v3978_v13 = vadd.f32 %v3945_v11, %v3775_v62  ;;  %v2774_v24 = vpop.f32.mrb[3].mxu0 }
 0x1f4   : > { %v2937_v9 = vadd.f32 %v3977_v4, %v5513_v16  ;;  %v3979_v10 = vadd.f32 %v2774_v24, %v1688_v5 }
 0x1f5   : > { %v3003_v51 = vmul.f32 0.70710677, %v2939_v21  ;;  %v2940_v33 = vadd.f32 %v3978_v13, %v5513_v16  ;;  %v2971_v48 = vmul.f32 0.5, %v2939_v21 }
 0x1f6   : > { %v3001_v39 = vmul.f32 0.70710677, %v2937_v9  ;;  %v2938_v58 = vadd.f32 %v3979_v10, %v5513_v16  ;;  %v2969_v17 = vmul.f32 0.5, %v2937_v9 }
 0x1f7   : > { %4318 = verf.f32 %v3003_v51  ;;  %v3004_v42 = vmul.f32 0.70710677, %v2940_v33  ;;  %v2972_v20 = vmul.f32 0.5, %v2940_v33 }
 0x1f8   : > { %4320 = verf.f32 %v3001_v39  ;;  %v3002_v15 = vmul.f32 0.70710677, %v2938_v58  ;;  %v3948_v27 = vpop.f32.mrb[4].mxu0 }
 0x1f9   : > { %4322 = verf.f32 %v3004_v42  ;;  %v3980_v6 = vadd.f32 %v3948_v27, %v3778_v63  ;;  %v2787_v7 = vpop.f32.mrb[5].mxu0 }
 0x1fa   : > { %4324 = verf.f32 %v3002_v15  ;;  %v3981_v60 = vadd.f32 %v2787_v7, %v1701_v49  ;;  %v3949_v14 = vpop.f32.mrb[6].mxu0 }
 0x1fb   : > { %v2943_v28 = vadd.f32 %v3980_v6, %v5513_v16  ;;  %v3982_v25 = vadd.f32 %v3949_v14, %v3779_v54  ;;  %v2790_v38 = vpop.f32.mrb[7].mxu0 }
 0x1fc   : > { %v2941_v46 = vadd.f32 %v3981_v60, %v5513_v16  ;;  %v3983_v47 = vadd.f32 %v2790_v38, %v1704_v36  ;;  %v2970_v36 = vmul.f32 0.5, %v2938_v58 }
 0x1fd   : > { %v3007_v32 = vmul.f32 0.70710677, %v2943_v28  ;;  %v2944_v18 = vadd.f32 %v3982_v25, %v5513_v16  ;;  %v2975_v13 = vmul.f32 0.5, %v2943_v28 }
 0x1fe   : > { %v3005_v43 = vmul.f32 0.70710677, %v2941_v46  ;;  %v5524_v55 = vadd.f32 %v3983_v47, %v5513_v16  ;;  %v2973_v24 = vmul.f32 0.5, %v2941_v46 }
 0x1ff   : > { %4326 = verf.f32 %v3007_v32  ;;  %v3008_v12 = vmul.f32 0.70710677, %v2944_v18  ;;  %v2976_v58 = vmul.f32 0.5, %v2944_v18 }
 0x200   : > { %4328 = verf.f32 %v3005_v43  ;;  %v3006_v23 = vmul.f32 0.70710677, %v5524_v55  ;;  %v3952_v59 = vpop.f32.mrb[8].mxu0  ;;  %v2974_v47 = vmul.f32 0.5, %v5524_v55 }
 0x201   : > { %v4319_v35 = vpop.eup %4318  ;;  %4330 = verf.f32 %v3008_v12  ;;  %v3984_v2 = vadd.f32 %v3952_v59, %v3782_v45  ;;  %v2803_v61 = vpop.f32.mrb[9].mxu0 }
 0x202   : > { %v4321_v56 = vpop.eup %4320  ;;  %v3067_v53 = vadd.f32 1.0, %v4319_v35  ;;  %4332 = verf.f32 %v3006_v23  ;;  %v3985_v34 = vadd.f32 %v2803_v61, %v1717_v31  ;;  %v3953_v37 = vpop.f32.mrb[10].mxu0 }
 0x203   : > { %v4323_v41 = vpop.eup %4322  ;;  %v3065_v50 = vadd.f32 1.0, %v4321_v56  ;;  %v5530_v0 = vadd.f32 %v3984_v2, %v5513_v16  ;;  %v3986_v22 = vadd.f32 %v3953_v37, %v5498_v29  ;;  %v2806_v30 = vpop.f32.mrb[11].mxu0 }
 0x204   : > { %v4325_v57 = vpop.eup %4324  ;;  %v3099_v62 = vmul.f32 %v3067_v53, %v2971_v48  ;;  %v3068_v5 = vadd.f32 1.0, %v4323_v41  ;;  %v5534_v63 = vadd.f32 %v3985_v34, %v5513_v16  ;;  %v3987_v49 = vadd.f32 %v2806_v30, %v5500_v26 }
 0x205   : > { %v3097_v54 = vmul.f32 %v3065_v50, %v2969_v17  ;;  %v3066_v45 = vadd.f32 1.0, %v4325_v57  ;;  %v3011_v31 = vmul.f32 0.70710677, %v5530_v0  ;;  %v5543_v52 = vadd.f32 %v3986_v22, %v5513_v16 }
 0x206   : > { %3131 = vst [vmem:[%s5538_s11 + $0x10] sm:$0xff] %v3099_v62  ;;  %v3100_v29 = vmul.f32 %v3068_v5, %v2972_v20  ;;  %v3009_v19 = vmul.f32 0.70710677, %v5534_v63  ;;  %v5547_v3 = vadd.f32 %v3987_v49, %v5513_v16  ;;  %v2979_v2 = vmul.f32 0.5, %v5530_v0 }
 0x207   : > { %3129 = vst [vmem:[%s5538_s11] sm:$0xff] %v3097_v54  ;;  %v3098_v26 = vmul.f32 %v3066_v45, %v2970_v36  ;;  %4334 = verf.f32 %v3011_v31  ;;  %v3012_v4 = vmul.f32 0.70710677, %v5543_v52  ;;  %v2977_v41 = vmul.f32 0.5, %v5534_v63 }
 0x208   : > { %3132 = vst [vmem:[%s5538_s11 + $0x18] sm:$0xff] %v3100_v29  ;;  %4336 = verf.f32 %v3009_v19  ;;  %v3956_v11 = vpop.f32.mrb[12].mxu0  ;;  %v3010_v9 = vmul.f32 0.70710677, %v5547_v3  ;;  %v2980_v29 = vmul.f32 0.5, %v5543_v52 }
 0x209   : > { %v4327_v21 = vpop.eup %4326  ;;  %3130 = vst [vmem:[%s5538_s11 + $0x8] sm:$0xff] %v3098_v26  ;;  %v3988_v10 = vadd.f32 %v3956_v11, %v5502_v44  ;;  %v2819_v51 = vpop.f32.mrb[13].mxu0  ;;  %4338 = verf.f32 %v3012_v4  ;;  %v2978_v4 = vmul.f32 0.5, %v5547_v3 }
 0x20a   : > { %v4329_v33 = vpop.eup %4328  ;;  %v3071_v39 = vadd.f32 1.0, %v4327_v21  ;;  %v3989_v42 = vadd.f32 %v2819_v51, %v5504_v8  ;;  %v3957_v15 = vpop.f32.mrb[14].mxu0  ;;  %4340 = verf.f32 %v3010_v9 }
 0x20b   : > { %v4331_v27 = vpop.eup %4330  ;;  %v3069_v6 = vadd.f32 1.0, %v4329_v33  ;;  %v5556_v7 = vadd.f32 %v3988_v10, %v5513_v16  ;;  %v3990_v60 = vadd.f32 %v3957_v15, %v5506_v1  ;;  %v2822_v14 = vpop.f32.mrb[15].mxu0 }
 0x20c   : > { %v4333_v44 = vpop.eup %4332  ;;  %v3103_v28 = vmul.f32 %v3071_v39, %v2975_v13  ;;  %v3072_v25 = vadd.f32 1.0, %v4331_v27  ;;  %v5560_v38 = vadd.f32 %v3989_v42, %v5513_v16  ;;  %v3991_v8 = vadd.f32 %v2822_v14, %v5508_v40 }
 0x20d   : > { %v3101_v46 = vmul.f32 %v3069_v6, %v2973_v24  ;;  %v3070_v32 = vadd.f32 1.0, %v4333_v44  ;;  %v3015_v18 = vmul.f32 0.70710677, %v5556_v7  ;;  %v5568_v12 = vadd.f32 %v3990_v60, %v5513_v16 }
 0x20e   : > { %3135 = vst [vmem:[%s5538_s11 + $0x30] sm:$0xff] %v3103_v28  ;;  %v3104_v43 = vmul.f32 %v3072_v25, %v2976_v58  ;;  %v3013_v1 = vmul.f32 0.70710677, %v5560_v38  ;;  %v5572_v59 = vadd.f32 %v3991_v8, %v5513_v16  ;;  %v2983_v39 = vmul.f32 0.5, %v5556_v7 }
 0x20f   : > { %3133 = vst [vmem:[%s5538_s11 + $0x20] sm:$0xff] %v3101_v46  ;;  %v3102_v23 = vmul.f32 %v3070_v32, %v2974_v47  ;;  %4342 = verf.f32 %v3015_v18  ;;  %v3016_v40 = vmul.f32 0.70710677, %v5568_v12  ;;  %v2981_v14 = vmul.f32 0.5, %v5560_v38 }
 0x210   : > { %3136 = vst [vmem:[%s5538_s11 + $0x38] sm:$0xff] %v3104_v43  ;;  %4344 = verf.f32 %v3013_v1  ;;  %v3824_v55 = vpop.f32.mrb[16].mxu1  ;;  %v3960_v35 = vpop.f32.mrb[16].mxu0  ;;  %v3014_v61 = vmul.f32 0.70710677, %v5572_v59 }
 0x211   : > { %v4335_v48 = vpop.eup %4334  ;;  %3134 = vst [vmem:[%s5538_s11 + $0x28] sm:$0xff] %v3102_v23  ;;  %v3992_v56 = vadd.f32 %v3960_v35, %v3824_v55  ;;  %v1977_v53 = vpop.f32.mrb[17].mxu1  ;;  %4346 = verf.f32 %v3016_v40  ;;  %v2984_v55 = vmul.f32 0.5, %v5568_v12 }
 0x212   : > { %v2835_v17 = vpop.f32.mrb[17].mxu0  ;;  %v4337_v34 = vpop.eup %4336  ;;  %v3075_v37 = vadd.f32 1.0, %v4335_v48  ;;  %4348 = verf.f32 %v3014_v61 }
 0x213   : > { %v3993_v50 = vadd.f32 %v2835_v17, %v1977_v53  ;;  %v3825_v20 = vpop.f32.mrb[18].mxu1  ;;  %v3961_v22 = vpop.f32.mrb[18].mxu0  ;;  %v3073_v30 = vadd.f32 1.0, %v4337_v34  ;;  %v5581_v57 = vadd.f32 %v3992_v56, %v5513_v16 }
 0x214   : > { %v3994_v0 = vadd.f32 %v3961_v22, %v3825_v20  ;;  %v1980_v62 = vpop.f32.mrb[19].mxu1  ;;  %v2838_v5 = vpop.f32.mrb[19].mxu0  ;;  %v3107_v54 = vmul.f32 %v3075_v37, %v2979_v2  ;;  %v2982_v2 = vmul.f32 0.5, %v5572_v59 }
 0x215   : > { %v4339_v49 = vpop.eup %4338  ;;  %v5584_v36 = vadd.f32 %v3993_v50, %v5513_v16  ;;  %v3995_v63 = vadd.f32 %v2838_v5, %v1980_v62  ;;  %v3105_v31 = vmul.f32 %v3073_v30, %v2977_v41  ;;  %v3019_v26 = vmul.f32 0.70710677, %v5581_v57 }
 0x216   : > { %v4341_v45 = vpop.eup %4340  ;;  %v3076_v19 = vadd.f32 1.0, %v4339_v49  ;;  %3139 = vst [vmem:[%s5538_s11 + $0x50] sm:$0xff] %v3107_v54  ;;  %v5592_v13 = vadd.f32 %v3994_v0, %v5513_v16  ;;  %v2987_v20 = vmul.f32 0.5, %v5581_v57 }
 0x217   : > { %v3074_v11 = vadd.f32 1.0, %v4341_v45  ;;  %v3017_v21 = vmul.f32 0.70710677, %v5584_v36  ;;  %3137 = vst [vmem:[%s5538_s11 + $0x40] sm:$0xff] %v3105_v31  ;;  %4350 = verf.f32 %v3019_v26  ;;  %v5596_v9 = vadd.f32 %v3995_v63, %v5513_v16 }
 0x218   : > { %v3108_v24 = vmul.f32 %v3076_v19, %v2980_v29  ;;  %v3020_v10 = vmul.f32 0.70710677, %v5592_v13  ;;  %v3828_v51 = vpop.f32.mrb[20].mxu1  ;;  %v3964_v33 = vpop.f32.mrb[20].mxu0  ;;  %v2985_v54 = vmul.f32 0.5, %v5584_v36 }
 0x219   : > { %v3106_v52 = vmul.f32 %v3074_v11, %v2978_v4  ;;  %4352 = verf.f32 %v3017_v21  ;;  %v4343_v3 = vpop.eup %4342  ;;  %v3018_v58 = vmul.f32 0.70710677, %v5596_v9  ;;  %v3996_v42 = vadd.f32 %v3964_v33, %v3828_v51  ;;  %v1993_v15 = vpop.f32.mrb[21].mxu1 }
 0x21a   : > { %3140 = vst [vmem:[%s5538_s11 + $0x58] sm:$0xff] %v3108_v24  ;;  %v2851_v27 = vpop.f32.mrb[21].mxu0  ;;  %v4345_v6 = vpop.eup %4344  ;;  %v3079_v60 = vadd.f32 1.0, %v4343_v3  ;;  %4354 = verf.f32 %v3020_v10  ;;  %v2988_v51 = vmul.f32 0.5, %v5592_v13 }
 0x21b   : > { %3138 = vst [vmem:[%s5538_s11 + $0x48] sm:$0xff] %v3106_v52  ;;  %v3997_v44 = vadd.f32 %v2851_v27, %v1993_v15  ;;  %v3829_v28 = vpop.f32.mrb[22].mxu1  ;;  %v3965_v25 = vpop.f32.mrb[22].mxu0  ;;  %v3077_v8 = vadd.f32 1.0, %v4345_v6  ;;  %4356 = verf.f32 %v3018_v58  ;;  %v5605_v46 = vadd.f32 %v3996_v42, %v5513_v16 }
 0x21c   : > { %v3998_v7 = vadd.f32 %v3965_v25, %v3829_v28  ;;  %v1996_v47 = vpop.f32.mrb[23].mxu1  ;;  %v2854_v32 = vpop.f32.mrb[23].mxu0  ;;  %v3111_v43 = vmul.f32 %v3079_v60, %v2983_v39  ;;  %v2986_v39 = vmul.f32 0.5, %v5596_v9 }
 0x21d   : > { %v4347_v18 = vpop.eup %4346  ;;  %v5608_v1 = vadd.f32 %v3997_v44, %v5513_v16  ;;  %v3999_v38 = vadd.f32 %v2854_v32, %v1996_v47  ;;  %v3109_v40 = vmul.f32 %v3077_v8, %v2981_v14  ;;  %v3023_v48 = vmul.f32 0.70710677, %v5605_v46 }
 0x21e   : > { %v4349_v23 = vpop.eup %4348  ;;  %v3080_v35 = vadd.f32 1.0, %v4347_v18  ;;  %3143 = vst [vmem:[%s5538_s11 + $0x70] sm:$0xff] %v3111_v43  ;;  %v5616_v53 = vadd.f32 %v3998_v7, %v5513_v16  ;;  %v2991_v28 = vmul.f32 0.5, %v5605_v46 }
 0x21f   : > { %v3078_v61 = vadd.f32 1.0, %v4349_v23  ;;  %v3021_v56 = vmul.f32 0.70710677, %v5608_v1  ;;  %3141 = vst [vmem:[%s5538_s11 + $0x60] sm:$0xff] %v3109_v40  ;;  %4358 = verf.f32 %v3023_v48  ;;  %v5620_v34 = vadd.f32 %v3999_v38, %v5513_v16 }
 0x220   : > { %v3112_v17 = vmul.f32 %v3080_v35, %v2984_v55  ;;  %v3024_v37 = vmul.f32 0.70710677, %v5616_v53  ;;  %v3832_v41 = vpop.f32.mrb[24].mxu1  ;;  %v3968_v50 = vpop.f32.mrb[24].mxu0  ;;  %v2989_v43 = vmul.f32 0.5, %v5608_v1 }
 0x221   : > { %v3110_v12 = vmul.f32 %v3078_v61, %v2982_v2  ;;  %4360 = verf.f32 %v3021_v56  ;;  %v4351_v59 = vpop.eup %4350  ;;  %v3022_v22 = vmul.f32 0.70710677, %v5620_v34  ;;  %v4000_v30 = vadd.f32 %v3968_v50, %v3832_v41  ;;  %v2009_v0 = vpop.f32.mrb[25].mxu1 }
 0x222   : > { %3144 = vst [vmem:[%s5538_s11 + $0x78] sm:$0xff] %v3112_v17  ;;  %v2867_v62 = vpop.f32.mrb[25].mxu0  ;;  %v3083_v49 = vadd.f32 1.0, %v4351_v59  ;;  %4362 = verf.f32 %v3024_v37  ;;  %v3833_v45 = vpop.f32.mrb[26].mxu1  ;;  %v2992_v41 = vmul.f32 0.5, %v5616_v53 }
 0x223   : > { %v4353_v5 = vpop.eup %4352  ;;  %3142 = vst [vmem:[%s5538_s11 + $0x68] sm:$0xff] %v3110_v12  ;;  %v4001_v63 = vadd.f32 %v2867_v62, %v2009_v0  ;;  %v3969_v31 = vpop.f32.mrb[26].mxu0  ;;  %4364 = verf.f32 %v3022_v22  ;;  %v5629_v19 = vadd.f32 %v4000_v30, %v5513_v16 }
 0x224   : > { %v3081_v29 = vadd.f32 1.0, %v4353_v5  ;;  %v4002_v57 = vadd.f32 %v3969_v31, %v3833_v45  ;;  %v2012_v26 = vpop.f32.mrb[27].mxu1  ;;  %v2870_v4 = vpop.f32.mrb[27].mxu0  ;;  %v3115_v21 = vmul.f32 %v3083_v49, %v2987_v20  ;;  %v2990_v20 = vmul.f32 0.5, %v5620_v34 }
 0x225   : > { %v4355_v11 = vpop.eup %4354  ;;  %v5632_v24 = vadd.f32 %v4001_v63, %v5513_v16  ;;  %v4003_v36 = vadd.f32 %v2870_v4, %v2012_v26  ;;  %v3027_v3 = vmul.f32 0.70710677, %v5629_v19  ;;  %v2995_v34 = vmul.f32 0.5, %v5629_v19 }
 0x226   : > { %v4357_v52 = vpop.eup %4356  ;;  %v3113_v10 = vmul.f32 %v3081_v29, %v2985_v54  ;;  %v3084_v33 = vadd.f32 1.0, %v4355_v11  ;;  %3147 = vst [vmem:[%s5538_s11 + $0x90] sm:$0xff] %v3115_v21  ;;  %v5640_v15 = vadd.f32 %v4002_v57, %v5513_v16 }
 0x227   : > { %v3082_v58 = vadd.f32 1.0, %v4357_v52  ;;  %v3025_v42 = vmul.f32 0.70710677, %v5632_v24  ;;  %4366 = verf.f32 %v3027_v3  ;;  %v5644_v6 = vadd.f32 %v4003_v36, %v5513_v16 }
 0x228   : > { %3145 = vst [vmem:[%s5538_s11 + $0x80] sm:$0xff] %v3113_v10  ;;  %v3116_v27 = vmul.f32 %v3084_v33, %v2988_v51  ;;  %v3028_v60 = vmul.f32 0.70710677, %v5640_v15  ;;  %v3836_v14 = vpop.f32.mrb[28].mxu1  ;;  %v3972_v44 = vpop.f32.mrb[28].mxu0  ;;  %v2993_v29 = vmul.f32 0.5, %v5632_v24 }
 0x229   : > { %v3114_v13 = vmul.f32 %v3082_v58, %v2986_v39  ;;  %4368 = verf.f32 %v3025_v42  ;;  %v4359_v9 = vpop.eup %4358  ;;  %v3026_v25 = vmul.f32 0.70710677, %v5644_v6  ;;  %v4004_v8 = vadd.f32 %v3972_v44, %v3836_v14  ;;  %v2025_v7 = vpop.f32.mrb[29].mxu1 }
 0x22a   : > { %3148 = vst [vmem:[%s5538_s11 + $0x98] sm:$0xff] %v3116_v27  ;;  %v2883_v47 = vpop.f32.mrb[29].mxu0  ;;  %v3087_v18 = vadd.f32 1.0, %v4359_v9  ;;  %4370 = verf.f32 %v3028_v60  ;;  %v3837_v23 = vpop.f32.mrb[30].mxu1  ;;  %v2996_v21 = vmul.f32 0.5, %v5640_v15  ;;  %v2994_v52 = vmul.f32 0.5, %v5644_v6 }
 0x22b   : > { %v4361_v32 = vpop.eup %4360  ;;  %3146 = vst [vmem:[%s5538_s11 + $0x88] sm:$0xff] %v3114_v13  ;;  %v4005_v38 = vadd.f32 %v2883_v47, %v2025_v7  ;;  %v3973_v40 = vpop.f32.mrb[30].mxu0  ;;  %4372 = verf.f32 %v3026_v25  ;;  %v2967_v35 = vadd.f32 %v4004_v8, %v5513_v16 }
 0x22c   : > { %v3085_v55 = vadd.f32 1.0, %v4361_v32  ;;  %v4006_v46 = vadd.f32 %v3973_v40, %v3837_v23  ;;  %v2028_v48 = vpop.f32.mrb[31].mxu1  ;;  %v2886_v2 = vpop.f32.mrb[31].mxu0  ;;  %v3119_v56 = vmul.f32 %v3087_v18, %v2991_v28 }
 0x22d   : > { %v4363_v61 = vpop.eup %4362  ;;  %v2965_v17 = vadd.f32 %v4005_v38, %v5513_v16  ;;  %v4007_v12 = vadd.f32 %v2886_v2, %v2028_v48  ;;  %v3031_v59 = vmul.f32 0.70710677, %v2967_v35  ;;  %v2999_v3 = vmul.f32 0.5, %v2967_v35 }
 0x22e   : > { %v4365_v37 = vpop.eup %4364  ;;  %v3117_v1 = vmul.f32 %v3085_v55, %v2989_v43  ;;  %v3088_v50 = vadd.f32 1.0, %v4363_v61  ;;  %3151 = vst [vmem:[%s5538_s11 + $0xb0] sm:$0xff] %v3119_v56  ;;  %v2968_v0 = vadd.f32 %v4006_v46, %v5513_v16 }
 0x22f   : > { %v3086_v22 = vadd.f32 1.0, %v4365_v37  ;;  %v3029_v30 = vmul.f32 0.70710677, %v2965_v17  ;;  %4374 = verf.f32 %v3031_v59  ;;  %v2966_v5 = vadd.f32 %v4007_v12, %v5513_v16 }
 0x230   : > { %3149 = vst [vmem:[%s5538_s11 + $0xa0] sm:$0xff] %v3117_v1  ;;  %v3120_v62 = vmul.f32 %v3088_v50, %v2992_v41  ;;  %v3032_v54 = vmul.f32 0.70710677, %v2968_v0  ;;  %v2997_v58 = vmul.f32 0.5, %v2965_v17  ;;  %v3000_v60 = vmul.f32 0.5, %v2968_v0 }
 0x231   : > { %v3118_v49 = vmul.f32 %v3086_v22, %v2990_v20  ;;  %4376 = verf.f32 %v3029_v30  ;;  %v4367_v53 = vpop.eup %4366  ;;  %v3030_v63 = vmul.f32 0.70710677, %v2966_v5  ;;  %v2998_v44 = vmul.f32 0.5, %v2966_v5 }
 0x232   : > { %3152 = vst [vmem:[%s5538_s11 + $0xb8] sm:$0xff] %v3120_v62  ;;  %v3091_v31 = vadd.f32 1.0, %v4367_v53  ;;  %4378 = verf.f32 %v3032_v54 }
 0x233   : > { %v4369_v45 = vpop.eup %4368  ;;  %3150 = vst [vmem:[%s5538_s11 + $0xa8] sm:$0xff] %v3118_v49  ;;  %4380 = verf.f32 %v3030_v63 }
 0x234   : > { %v3089_v57 = vadd.f32 1.0, %v4369_v45  ;;  %v4371_v16 = vpop.eup %4370  ;;  %v3123_v26 = vmul.f32 %v3091_v31, %v2995_v34 }
 0x235   : > { %v4373_v4 = vpop.eup %4372  ;;  %v3092_v36 = vadd.f32 1.0, %v4371_v16 }
 0x236   : > { %v3121_v11 = vmul.f32 %v3089_v57, %v2993_v29  ;;  %3155 = vst [vmem:[%s5538_s11 + $0xd0] sm:$0xff] %v3123_v26  ;;  %v3090_v19 = vadd.f32 1.0, %v4373_v4 }
 0x237   : > { %v3124_v10 = vmul.f32 %v3092_v36, %v2996_v21 }
 0x238   : > { %3153 = vst [vmem:[%s5538_s11 + $0xc0] sm:$0xff] %v3121_v11  ;;  %v3122_v24 = vmul.f32 %v3090_v19, %v2994_v52 }
 0x239   : > { %v4375_v51 = vpop.eup %4374  ;;  %3156 = vst [vmem:[%s5538_s11 + $0xd8] sm:$0xff] %v3124_v10 }
 0x23a   : > { %3154 = vst [vmem:[%s5538_s11 + $0xc8] sm:$0xff] %v3122_v24  ;;  %v3095_v39 = vadd.f32 1.0, %v4375_v51 }
 0x23b   : > { %v4377_v33 = vpop.eup %4376 }
 0x23c   : > { %v3093_v42 = vadd.f32 1.0, %v4377_v33  ;;  %v4379_v15 = vpop.eup %4378  ;;  %v3127_v27 = vmul.f32 %v3095_v39, %v2999_v3 }
 0x23d   : > { %v4381_v6 = vpop.eup %4380  ;;  %v3096_v14 = vadd.f32 1.0, %v4379_v15 }
 0x23e   : > { %v3125_v13 = vmul.f32 %v3093_v42, %v2997_v58  ;;  %3159 = vst [vmem:[%s5538_s11 + $0xf0] sm:$0xff] %v3127_v27  ;;  %v3094_v9 = vadd.f32 1.0, %v4381_v6 }
 0x23f   : > { %v3128_v28 = vmul.f32 %v3096_v14, %v3000_v60 }
 0x240   : > { %3157 = vst [vmem:[%s5538_s11 + $0xe0] sm:$0xff] %v3125_v13  ;;  %v3126_v25 = vmul.f32 %v3094_v9, %v2998_v44 }
 0x241   : > { %3160 = vst [vmem:[%s5538_s11 + $0xf8] sm:$0xff] %v3128_v28 }
 0x242   : > { %3158 = vst [vmem:[%s5538_s11 + $0xe8] sm:$0xff] %v3126_v25 }
 0x243   : > { %4399 = shalt.err (!%p4396_p5)
}
 0x244   : > { %s4400_s4 = scalar_lea.hbm %s5677_s26, 4096  ;;  %s4404_s7 = scalar_lea.hbm %s5734_s3, 8192 }
 0x245   : > { %p4401_p6 = scmp.ne.s32.totalorder %s5677_s26, %s4400_s4  ;;  %p4405_p10 = scmp.lt.u32.totalorder %s5677_s26, %s5734_s3 }
 0x246   : > { %p4406_p11 = scmp.lt.u32.totalorder %s4404_s7, %s4400_s4  ;;  %p4408_p13 = scmp.lt.u32.totalorder %s4400_s4, %s5677_s26 }
 0x247   : > { %p4402_p7 = pnand %p4401_p6, %p4529_p4 }
 0x248   : > { %p4407_p12 = por %p4406_p11, %p4405_p10 }
 0x249   : > { %p4403_p9 = pneg %p4402_p7 }
 0x24a   : > { %p4409_p0 = por %p4408_p13, %p4407_p12 }
 0x24c   : > { %p4410_p1 = pnand %p4409_p0, %p4403_p9 }
 0x24e   : > { %4413 = shalt.err (!%p4410_p1)
}
 0x24f   : > { %s4467_s10 = smov 128   ;;  %s4468_s11 = smov 8  }
 0x250   : > { %4243 = dma.vmem_to_hbm [thread:$0]  (%p4529_p4), %s5679_s19, 4096, %s5677_s26, %s5685_s15, %s4467_s10, %s4467_s10, %s4468_s11  }
 0x251 PF: > { %p4249_p2 = scmp.ge.s32.totalorder %s4464_s17, 2  ;;  %s3191_s18 = sand.u32 1, %s4444_s12  }
 0x252   : > { %s3192_s21 = scalar_lea.sflag [#allocation3], %s3191_s18 }
 0x253   : > { %p4246_p3 = pnand %p4249_p2, %p4536_p8 }
 0x255   : > { %4439 = dma.done.wait (!%p4246_p3), %s3192_s21, 4096  }
 0x256   : > { %4441 = vsyncadd (!%p4246_p3), %s3192_s21, 4294963200  ;;  %s16_s17 = sadd.s32 1, %s4464_s17   ;;  %s5814_s12 = smov %s4448_s13 }
 0x257   : > { %p13_p5 = scmp.ge.s32.totalorder %s16_s17, 4   ;;  %s5815_s13 = smov %s4452_s14 }
 0x258   : > { %s5816_s14 = smov %s4542_s25  ;;  %s5817_s15 = smov %s4460_s16 }
 0x259   : > { %s5818_s16 = smov %s5820_s20  ;;  %15 = sbr.rel (!%p13_p5) target bundleno = 4 (0x4), region = 81 }
 0x260   :  { %3197 = vsyncpa [#allocation3], 1 }
 0x261   :  { %3199 = vsyncpa [#allocation3 + $0x1], 1 }

</bundles_post_ra>
